<compile_context>
chip_gen: v6e
topology: v6e:2x2x1
jax: 0.10.0
libtpu: 0.0.40
codegen_flags: <defaults>
</compile_context>

<pallas_src>
import math
import functools

import jax
import jax.numpy as jnp
import numpy as np
from jax.experimental import pallas as pl
from jax.experimental.pallas import tpu as pltpu

NUM_HEADS = 4  # Attention(dim) default


def fused_self_attention_kernel(vq_ref, kb_ref, x_ref, wqkv_ref, wo_ref,
                                o_ref, act_ref, *,
                                num_heads, head_dim, orig_d, weights_resident):
    """grid = (batch_blocks, n_layers); activation resident in act_ref.

    vq_ref  : (Bb, N, 1) f32, 1.0 = valid query row
    kb_ref  : (Bb, 1, N) f32, additive key bias (0.0 valid, -1e38 masked)
    x_ref   : (Bb, N, Dp) f32, model input (feature dim zero-padded to Dp)
    wqkv_ref: (L or 1, Dp, 3*Dp) bf16, fused (wq | wk*1/sqrt(D) | wv)
    wo_ref  : (L or 1, Dp, Dp)  bf16
    o_ref   : (Bb, N, Dp) f32, final output (written only at the last layer)
    act_ref : (Bb, N, Dp) f32 VMEM scratch, layer-to-layer activation
    """
    layer = pl.program_id(1)
    n_layers = pl.num_programs(1)
    Bb, N, Dp = act_ref.shape

    valid_q = vq_ref[...]                       # (Bb, N, 1)
    key_bias = kb_ref[...]                      # (Bb, 1, N)

    @pl.when(layer == 0)
    def _():
        # Q/K/V.masked_fill(mask, 0): only needed once -- every subsequent
        # layer's activation is already exactly 0 on masked query rows.
        act_ref[...] = x_ref[...] * valid_q

    if weights_resident:
        w_qkv = wqkv_ref[layer]                 # (Dp, 3*Dp) bf16
        w_o = wo_ref[layer]                     # (Dp, Dp)   bf16
    else:
        w_qkv = wqkv_ref[0]
        w_o = wo_ref[0]

    x = act_ref[...]
    xb = x.reshape(Bb * N, Dp).astype(jnp.bfloat16)

    # Fused Q/K/V projection: one (Bb*N, Dp) @ (Dp, 3*Dp) MXU matmul,
    # bf16 operands, f32 accumulation.  Slices are 128-lane aligned.
    qkv = jnp.dot(xb, w_qkv,
                  preferred_element_type=jnp.float32).reshape(Bb, N, 3 * Dp)
    q = qkv[:, :, 0:Dp]                         # f32, kept for the residual
    k = qkv[:, :, Dp:2 * Dp]                    # already pre-scaled by 1/sqrt(D)
    v = qkv[:, :, 2 * Dp:3 * Dp]

    # Cast once before the head loop (halves bytes moved by the lane slices).
    q_bf = q.astype(jnp.bfloat16)
    k_bf = k.astype(jnp.bfloat16)
    v_bf = v.astype(jnp.bfloat16)

    # Per-head attention, batched over the Bb sequences of this block.
    # TODO(synk): at production D (>=128) fold the head axis into the einsum
    # batch dim (pltpu.einshape) instead of lane slices + concatenate, and on
    # v7x at long N bound live ranges with lax.fori_loop / flash-style key
    # tiling; at these shapes the unrolled loop's N^2 tensors are tiny.
    head_outs = []
    for h in range(num_heads):
        sl = slice(h * head_dim, (h + 1) * head_dim)
        s = jnp.einsum('bqd,bkd->bqk', q_bf[:, :, sl], k_bf[:, :, sl],
                       preferred_element_type=jnp.float32)      # (Bb, N, N)
        s = s + key_bias                        # key-only additive mask
        s_max = jnp.max(s, axis=-1, keepdims=True)
        p = jnp.exp(s - s_max)                  # masked keys underflow to 0
        a = p * pl.reciprocal(jnp.sum(p, axis=-1, keepdims=True), approx=True)
        head_outs.append(
            jnp.einsum('bqk,bkd->bqd', a.astype(jnp.bfloat16), v_bf[:, :, sl],
                       preferred_element_type=jnp.float32))
    if Dp > orig_d:
        # padded feature columns stay exactly zero
        head_outs.append(jnp.zeros((Bb, N, Dp - orig_d), jnp.float32))
    # Masked-key probabilities are exactly 0 (same mask for Q and K => every
    # valid query attends at least itself, so s_max is finite); only masked
    # query rows need zeroing -> one multiply on (Bb, N, Dp).
    o_attn = jnp.concatenate(head_outs, axis=-1) * valid_q      # (Bb, N, Dp)

    # TODO(synk): attn_dropout / residual dropouts are identity (eval mode).
    o = q + o_attn                              # residual with *projected* Q
    fco = jnp.dot(o.reshape(Bb * N, Dp).astype(jnp.bfloat16), w_o,
                  preferred_element_type=jnp.float32).reshape(Bb, N, Dp)
    fco = jnp.maximum(fco, 0.0) * valid_q       # relu(masked_forward(fc_o, O))
    new_act = o + fco

    act_ref[...] = new_act                      # stays resident for layer l+1

    @pl.when(layer == n_layers - 1)
    def _():
        o_ref[...] = new_act.astype(o_ref.dtype)   # lane-dense (Dp mult of 128)


def _device_kind():
    try:
        return jax.devices()[0].device_kind.lower()
    except Exception:
        return ""


def _choose_block_batch(B, N, target_rows=1024, min_blocks=1):
    """Largest divisor Bb of B with Bb*N <= target_rows.  min_blocks=2 only on
    v7x so the 'parallel' batch axis can feed both TensorCores; on v5e/v6e the
    whole batch goes in one block (bigger matmul M, fewer grid steps)."""
    best = 1
    for bb in range(1, B + 1):
        if bb * N > target_rows:
            break
        if B % bb:
            continue
        if B // bb < min_blocks:
            continue
        best = bb
    return best


def _vmem_limit_bytes(Bb, N, Dp, L, weights_resident, kind):
    """Size the scoped-VMEM limit from the actual working set, capped per
    generation (v7x has only 64 MiB physical VMEM)."""
    w_stack = L * (Dp * 3 * Dp + Dp * Dp) * 2           # bf16 weight stack
    w_res = 2 * (w_stack if weights_resident
                 else (Dp * 3 * Dp + Dp * Dp) * 2)      # double-buffered
    blk = Bb * N * Dp * 4
    io = 2 * 2 * blk + blk                              # x + out dbl-buf + act scratch
    inter = 8 * blk + 4 * Bb * N * N * 4                # qkv/q/k/v/o + scores
    est = w_res + io + inter + (8 << 20)                # + headroom
    cap = (48 << 20) if "v7" in kind else (96 << 20)
    return int(min(max(est, 32 << 20), cap))


def self_attention_forward(x, mask, params, *, num_heads=NUM_HEADS):
    """SelfAttention.forward: all Attention layers fused in one pallas_call.

    params: list of (wq, wk, wv, wo), each (D, D) f32, pre-transposed so the
            kernel computes x @ W.  mask: bool (B, N), True == masked.
    """
    B, N, D = x.shape
    L = len(params)
    head_dim = D // num_heads
    inv_sqrt_dim = 1.0 / math.sqrt(D)
    kind = _device_kind()

    # Zero-pad the feature dim to a multiple of 128 so every store is
    # lane-dense (biggest single lever for store-bound small-D configs).
    Dp = ((D + 127) // 128) * 128

    def pad_w(w):
        return jnp.pad(w, ((0, Dp - D), (0, Dp - D)))

    # Fused QKV weight stack (L, Dp, 3*Dp); 1/sqrt(D) hoisted into wk (K only
    # feeds the scores; Q can't absorb it because of the residual O = Q + A@V).
    wq = jnp.stack([pad_w(p[0]) for p in params])
    wk = jnp.stack([pad_w(p[1] * inv_sqrt_dim) for p in params])
    wv = jnp.stack([pad_w(p[2]) for p in params])
    wqkv = jnp.concatenate([wq, wk, wv], axis=-1).astype(jnp.bfloat16)
    wo = jnp.stack([pad_w(p[3]) for p in params]).astype(jnp.bfloat16)

    x_pad = jnp.pad(x, ((0, 0), (0, 0), (0, Dp - D)))
    mask_f = mask.astype(jnp.float32)
    valid_q = (1.0 - mask_f)[:, :, None]                  # (B, N, 1)
    key_bias = (-1e38 * mask_f)[:, None, :]               # (B, 1, N) lane-dense

    min_blocks = 2 if "v7" in kind else 1                 # 2 TCs only on v7x
    Bb = _choose_block_batch(B, N, target_rows=1024, min_blocks=min_blocks)
    nb = B // Bb

    # Keep the full weight stack resident in VMEM when it fits the budget.
    w_stack_bytes = int(wqkv.size + wo.size) * 2          # bf16
    resident_budget = (24 << 20) if "v7" in kind else (64 << 20)
    weights_resident = 2 * w_stack_bytes <= resident_budget

    if weights_resident:
        # Constant index_map -> fetched once, never re-streamed per (b, l).
        wqkv_spec = pl.BlockSpec((L, Dp, 3 * Dp), lambda b, l: (0, 0, 0))
        wo_spec = pl.BlockSpec((L, Dp, Dp), lambda b, l: (0, 0, 0))
    else:
        wqkv_spec = pl.BlockSpec((1, Dp, 3 * Dp), lambda b, l: (l, 0, 0))
        wo_spec = pl.BlockSpec((1, Dp, Dp), lambda b, l: (l, 0, 0))

    vmem_limit = _vmem_limit_bytes(Bb, N, Dp, L, weights_resident, kind)

    kernel = functools.partial(fused_self_attention_kernel,
                               num_heads=num_heads, head_dim=head_dim,
                               orig_d=D, weights_resident=weights_resident)

    out_pad = pl.pallas_call(
        kernel,
        out_shape=jax.ShapeDtypeStruct((B, N, Dp), x.dtype),
        grid_spec=pltpu.PrefetchScalarGridSpec(
            num_scalar_prefetch=0,
            grid=(nb, L),                          # layer innermost, sequential
            in_specs=[
                pl.BlockSpec((Bb, N, 1), lambda b, l: (b, 0, 0)),   # valid_q
                pl.BlockSpec((Bb, 1, N), lambda b, l: (b, 0, 0)),   # key_bias
                pl.BlockSpec((Bb, N, Dp), lambda b, l: (b, 0, 0)),  # x (padded)
                wqkv_spec,                                          # fused QKV
                wo_spec,                                            # wo
            ],
            out_specs=pl.BlockSpec((Bb, N, Dp), lambda b, l: (b, 0, 0)),
            scratch_shapes=[pltpu.VMEM((Bb, N, Dp), jnp.float32)],
        ),
        compiler_params=pltpu.CompilerParams(
            dimension_semantics=("parallel", "arbitrary"),
            vmem_limit_bytes=vmem_limit),
    )(valid_q, key_bias, x_pad, wqkv, wo)

    return out_pad[:, :, :D]


# ---------------- pure-JAX reference (for in-script sanity check) -----------
def _ref_layer(x, mask, wq, wk, wv, wo):
    B, N, D = x.shape
    ds = D // NUM_HEADS
    valid = 1.0 - mask.astype(jnp.float32)[..., None]          # (B, N, 1)
    x = x * valid
    q = x @ wq
    k = x @ wk
    v = x @ wv
    qh = q.reshape(B, N, NUM_HEADS, ds).transpose(0, 2, 1, 3)
    kh = k.reshape(B, N, NUM_HEADS, ds).transpose(0, 2, 1, 3)
    vh = v.reshape(B, N, NUM_HEADS, ds).transpose(0, 2, 1, 3)
    s = jnp.einsum('bhqd,bhkd->bhqk', qh, kh) / math.sqrt(D)
    pair_ok = (jnp.einsum('bqi,bki->bqk', valid, valid) > 0.5)[:, None]
    s = jnp.where(pair_ok, s, -1e38)
    a = jax.nn.softmax(s, axis=-1)
    a = jnp.where(pair_ok, a, 0.0)
    o_attn = jnp.einsum('bhqk,bhkd->bhqd', a, vh).transpose(0, 2, 1, 3)
    o_attn = o_attn.reshape(B, N, D)
    o = q + o_attn
    fco = jnp.maximum(o @ wo, 0.0) * valid
    return o + fco


def self_attention_ref(x, mask, params):
    for (wq, wk, wv, wo) in params:
        x = _ref_layer(x, mask, wq, wk, wv, wo)
    return x


if __name__ == "__main__":
    B, N, D, n_layers = 4, 8, 32, 2

    key = jax.random.PRNGKey(0)
    keys = jax.random.split(key, 1 + 4 * n_layers)
    kx, wkeys = keys[0], keys[1:]

    x = jax.random.normal(kx, (B, N, D), dtype=jnp.float32)
    # mask: True == padded / masked positions (last two tokens of each seq)
    mask = jnp.zeros((B, N), dtype=bool).at[:, N - 2:].set(True)

    # deterministic synthetic weights (pre-transposed: (D_in, D_out))
    params = []
    wi = iter(wkeys)
    for _ in range(n_layers):
        params.append(tuple(
            0.1 * jax.random.normal(next(wi), (D, D), dtype=jnp.float32)
            for _ in range(4)))

    out = self_attention_forward(x, mask, params)
    out = jax.block_until_ready(out)

    ref = self_attention_ref(x, mask, params)
    # bf16 MXU operands + approx reciprocal -> slightly looser tolerance
    np.testing.assert_allclose(np.asarray(out), np.asarray(ref),
                               rtol=3e-2, atol=3e-2)
    print("KERNEL_OK")
</pallas_src>

<mosaic_0001>
module attributes {stable_mosaic.version = 11 : i64} {
  func.func @fused_self_attention_kernel(%arg0: i32, %arg1: i32, %arg2: memref<4x8x1xf32, #tpu.memory_space<vmem>>, %arg3: memref<4x1x8xf32, #tpu.memory_space<vmem>>, %arg4: memref<4x8x128xf32, #tpu.memory_space<vmem>>, %arg5: memref<2x128x384xbf16, #tpu.memory_space<vmem>>, %arg6: memref<2x128x128xbf16, #tpu.memory_space<vmem>>, %arg7: memref<4x8x128xf32, #tpu.memory_space<vmem>>, %arg8: memref<4x8x128xf32, #tpu.memory_space<vmem>>) attributes {dimension_semantics = [#tpu.dimension_semantics<parallel>, #tpu.dimension_semantics<arbitrary>], iteration_bounds = array<i64: 1, 2>, scalar_prefetch = 0 : i64, scratch_operands = 1 : i64, tpu.core_type = #tpu.core_type<tc>, window_params = [{transform_indices = @transform_0, window_bounds = array<i64: 4, 8, 1>}, {transform_indices = @transform_1, window_bounds = array<i64: 4, 1, 8>}, {transform_indices = @transform_2, window_bounds = array<i64: 4, 8, 128>}, {pipeline_mode = #tpu.pipeline_mode<synchronous>, transform_indices = @transform_3, window_bounds = array<i64: 2, 128, 384>}, {pipeline_mode = #tpu.pipeline_mode<synchronous>, transform_indices = @transform_4, window_bounds = array<i64: 2, 128, 128>}, {transform_indices = @transform_5, window_bounds = array<i64: 4, 8, 128>}]} {
    %c0 = arith.constant 0 : index
    %c0_0 = arith.constant 0 : index
    %c0_1 = arith.constant 0 : index
    %0 = vector.load %arg2[%c0, %c0_0, %c0_1] : memref<4x8x1xf32, #tpu.memory_space<vmem>>, vector<4x8x1xf32>
    %c0_2 = arith.constant 0 : index
    %c0_3 = arith.constant 0 : index
    %c0_4 = arith.constant 0 : index
    %1 = vector.load %arg3[%c0_2, %c0_3, %c0_4] : memref<4x1x8xf32, #tpu.memory_space<vmem>>, vector<4x1x8xf32>
    %c0_i32 = arith.constant 0 : i32
    %2 = arith.cmpi eq, %arg1, %c0_i32 : i32
    %3 = arith.extui %2 : i1 to i32
    %c0_i32_5 = arith.constant 0 : i32
    %4 = arith.cmpi ne, %3, %c0_i32_5 : i32
    scf.if %4 {
      %c0_36 = arith.constant 0 : index
      %c0_37 = arith.constant 0 : index
      %c0_38 = arith.constant 0 : index
      %112 = vector.load %arg4[%c0_36, %c0_37, %c0_38] : memref<4x8x128xf32, #tpu.memory_space<vmem>>, vector<4x8x128xf32>
      %113 = vector.broadcast %0 : vector<4x8x1xf32> to vector<4x8x128xf32>
      %114 = arith.mulf %112, %113 : vector<4x8x128xf32>
      %c0_39 = arith.constant 0 : index
      %c0_40 = arith.constant 0 : index
      %c0_41 = arith.constant 0 : index
      %115 = vector.load %arg8[%c0_39, %c0_40, %c0_41] : memref<4x8x128xf32, #tpu.memory_space<vmem>>, vector<4x8x128xf32>
      tpu.vector_store %arg8[%c0_39, %c0_40, %c0_41], %114 {strides = array<i32>} : memref<4x8x128xf32, #tpu.memory_space<vmem>>, vector<4x8x128xf32>,
    } else {
    }
    %5 = arith.index_cast %arg1 : i32 to index
    %c0_6 = arith.constant 0 : index
    %c0_7 = arith.constant 0 : index
    %6 = vector.load %arg5[%5, %c0_6, %c0_7] : memref<2x128x384xbf16, #tpu.memory_space<vmem>>, vector<1x128x384xbf16>
    %7 = vector.shape_cast %6 : vector<1x128x384xbf16> to vector<128x384xbf16>
    %8 = arith.index_cast %arg1 : i32 to index
    %c0_8 = arith.constant 0 : index
    %c0_9 = arith.constant 0 : index
    %9 = vector.load %arg6[%8, %c0_8, %c0_9] : memref<2x128x128xbf16, #tpu.memory_space<vmem>>, vector<1x128x128xbf16>
    %10 = vector.shape_cast %9 : vector<1x128x128xbf16> to vector<128x128xbf16>
    %c0_10 = arith.constant 0 : index
    %c0_11 = arith.constant 0 : index
    %c0_12 = arith.constant 0 : index
    %11 = vector.load %arg8[%c0_10, %c0_11, %c0_12] : memref<4x8x128xf32, #tpu.memory_space<vmem>>, vector<4x8x128xf32>
    %12 = vector.shape_cast %11 : vector<4x8x128xf32> to vector<32x128xf32>
    %13 = arith.truncf %12 : vector<32x128xf32> to vector<32x128xbf16>
    %cst = arith.constant dense<0.000000e+00> : vector<32x384xf32>
    %14 = tpu.matmul %13, %7, %cst {dimension_numbers = #tpu.dot_dimension_numbers<[1], [0], [0], [1], [0, 0, 1, 1], [], []>} : vector<32x128xbf16>, vector<128x384xbf16>, vector<32x384xf32> -> vector<32x384xf32>
    %15 = vector.shape_cast %14 : vector<32x384xf32> to vector<4x8x384xf32>
    %16 = vector.extract_strided_slice %15 {offsets = [0, 0, 0], sizes = [4, 8, 128], strides = [1, 1, 1]} : vector<4x8x384xf32> to vector<4x8x128xf32>
    %17 = vector.extract_strided_slice %15 {offsets = [0, 0, 128], sizes = [4, 8, 128], strides = [1, 1, 1]} : vector<4x8x384xf32> to vector<4x8x128xf32>
    %18 = vector.extract_strided_slice %15 {offsets = [0, 0, 256], sizes = [4, 8, 128], strides = [1, 1, 1]} : vector<4x8x384xf32> to vector<4x8x128xf32>
    %19 = arith.truncf %16 : vector<4x8x128xf32> to vector<4x8x128xbf16>
    %20 = arith.truncf %17 : vector<4x8x128xf32> to vector<4x8x128xbf16>
    %21 = arith.truncf %18 : vector<4x8x128xf32> to vector<4x8x128xbf16>
    %22 = vector.extract_strided_slice %19 {offsets = [0, 0, 0], sizes = [4, 8, 8], strides = [1, 1, 1]} : vector<4x8x128xbf16> to vector<4x8x8xbf16>
    %23 = vector.extract_strided_slice %20 {offsets = [0, 0, 0], sizes = [4, 8, 8], strides = [1, 1, 1]} : vector<4x8x128xbf16> to vector<4x8x8xbf16>
    "tpu.trace_start"() <{level = 10 : i32, message = "bqd,bkd->bqk"}> : () -> ()
    %cst_13 = arith.constant dense<0.000000e+00> : vector<4x8x8xf32>
    %24 = tpu.matmul %22, %23, %cst_13 {dimension_numbers = #tpu.dot_dimension_numbers<[2], [2], [1], [1], [0, 0, 0, 1, 1, 1], [0], [0]>} : vector<4x8x8xbf16>, vector<4x8x8xbf16>, vector<4x8x8xf32> -> vector<4x8x8xf32>
    "tpu.trace_stop"() : () -> ()
    %25 = vector.broadcast %1 : vector<4x1x8xf32> to vector<4x8x8xf32>
    %26 = arith.addf %24, %25 : vector<4x8x8xf32>
    %cst_14 = arith.constant dense<0xFF800000> : vector<4x8xf32>
    %27 = vector.multi_reduction <maximumf>, %26, %cst_14 [2] : vector<4x8x8xf32> to vector<4x8xf32>
    %28 = vector.shape_cast %27 : vector<4x8xf32> to vector<4x8x1xf32>
    %29 = vector.broadcast %28 : vector<4x8x1xf32> to vector<4x8x8xf32>
    %30 = arith.subf %26, %29 : vector<4x8x8xf32>
    %31 = math.exp %30 : vector<4x8x8xf32>
    %cst_15 = arith.constant dense<0.000000e+00> : vector<4x8xf32>
    %32 = vector.multi_reduction <add>, %31, %cst_15 [2] : vector<4x8x8xf32> to vector<4x8xf32>
    %33 = vector.shape_cast %32 : vector<4x8xf32> to vector<4x8x1xf32>
    %34 = tpu.reciprocal %33 {approx = true} : vector<4x8x1xf32> -> vector<4x8x1xf32>
    %35 = vector.broadcast %34 : vector<4x8x1xf32> to vector<4x8x8xf32>
    %36 = arith.mulf %31, %35 : vector<4x8x8xf32>
    %37 = arith.truncf %36 : vector<4x8x8xf32> to vector<4x8x8xbf16>
    %38 = vector.extract_strided_slice %21 {offsets = [0, 0, 0], sizes = [4, 8, 8], strides = [1, 1, 1]} : vector<4x8x128xbf16> to vector<4x8x8xbf16>
    "tpu.trace_start"() <{level = 10 : i32, message = "bqk,bkd->bqd"}> : () -> ()
    %cst_16 = arith.constant dense<0.000000e+00> : vector<4x8x8xf32>
    %39 = tpu.matmul %37, %38, %cst_16 {dimension_numbers = #tpu.dot_dimension_numbers<[2], [1], [1], [2], [0, 0, 0, 1, 1, 2], [0], [0]>} : vector<4x8x8xbf16>, vector<4x8x8xbf16>, vector<4x8x8xf32> -> vector<4x8x8xf32>
    "tpu.trace_stop"() : () -> ()
    %40 = vector.extract_strided_slice %19 {offsets = [0, 0, 8], sizes = [4, 8, 8], strides = [1, 1, 1]} : vector<4x8x128xbf16> to vector<4x8x8xbf16>
    %41 = vector.extract_strided_slice %20 {offsets = [0, 0, 8], sizes = [4, 8, 8], strides = [1, 1, 1]} : vector<4x8x128xbf16> to vector<4x8x8xbf16>
    "tpu.trace_start"() <{level = 10 : i32, message = "bqd,bkd->bqk"}> : () -> ()
    %cst_17 = arith.constant dense<0.000000e+00> : vector<4x8x8xf32>
    %42 = tpu.matmul %40, %41, %cst_17 {dimension_numbers = #tpu.dot_dimension_numbers<[2], [2], [1], [1], [0, 0, 0, 1, 1, 1], [0], [0]>} : vector<4x8x8xbf16>, vector<4x8x8xbf16>, vector<4x8x8xf32> -> vector<4x8x8xf32>
    "tpu.trace_stop"() : () -> ()
    %43 = vector.broadcast %1 : vector<4x1x8xf32> to vector<4x8x8xf32>
    %44 = arith.addf %42, %43 : vector<4x8x8xf32>
    %cst_18 = arith.constant dense<0xFF800000> : vector<4x8xf32>
    %45 = vector.multi_reduction <maximumf>, %44, %cst_18 [2] : vector<4x8x8xf32> to vector<4x8xf32>
    %46 = vector.shape_cast %45 : vector<4x8xf32> to vector<4x8x1xf32>
    %47 = vector.broadcast %46 : vector<4x8x1xf32> to vector<4x8x8xf32>
    %48 = arith.subf %44, %47 : vector<4x8x8xf32>
    %49 = math.exp %48 : vector<4x8x8xf32>
    %cst_19 = arith.constant dense<0.000000e+00> : vector<4x8xf32>
    %50 = vector.multi_reduction <add>, %49, %cst_19 [2] : vector<4x8x8xf32> to vector<4x8xf32>
    %51 = vector.shape_cast %50 : vector<4x8xf32> to vector<4x8x1xf32>
    %52 = tpu.reciprocal %51 {approx = true} : vector<4x8x1xf32> -> vector<4x8x1xf32>
    %53 = vector.broadcast %52 : vector<4x8x1xf32> to vector<4x8x8xf32>
    %54 = arith.mulf %49, %53 : vector<4x8x8xf32>
    %55 = arith.truncf %54 : vector<4x8x8xf32> to vector<4x8x8xbf16>
    %56 = vector.extract_strided_slice %21 {offsets = [0, 0, 8], sizes = [4, 8, 8], strides = [1, 1, 1]} : vector<4x8x128xbf16> to vector<4x8x8xbf16>
    "tpu.trace_start"() <{level = 10 : i32, message = "bqk,bkd->bqd"}> : () -> ()
    %cst_20 = arith.constant dense<0.000000e+00> : vector<4x8x8xf32>
    %57 = tpu.matmul %55, %56, %cst_20 {dimension_numbers = #tpu.dot_dimension_numbers<[2], [1], [1], [2], [0, 0, 0, 1, 1, 2], [0], [0]>} : vector<4x8x8xbf16>, vector<4x8x8xbf16>, vector<4x8x8xf32> -> vector<4x8x8xf32>
    "tpu.trace_stop"() : () -> ()
    %58 = vector.extract_strided_slice %19 {offsets = [0, 0, 16], sizes = [4, 8, 8], strides = [1, 1, 1]} : vector<4x8x128xbf16> to vector<4x8x8xbf16>
    %59 = vector.extract_strided_slice %20 {offsets = [0, 0, 16], sizes = [4, 8, 8], strides = [1, 1, 1]} : vector<4x8x128xbf16> to vector<4x8x8xbf16>
    "tpu.trace_start"() <{level = 10 : i32, message = "bqd,bkd->bqk"}> : () -> ()
    %cst_21 = arith.constant dense<0.000000e+00> : vector<4x8x8xf32>
    %60 = tpu.matmul %58, %59, %cst_21 {dimension_numbers = #tpu.dot_dimension_numbers<[2], [2], [1], [1], [0, 0, 0, 1, 1, 1], [0], [0]>} : vector<4x8x8xbf16>, vector<4x8x8xbf16>, vector<4x8x8xf32> -> vector<4x8x8xf32>
    "tpu.trace_stop"() : () -> ()
    %61 = vector.broadcast %1 : vector<4x1x8xf32> to vector<4x8x8xf32>
    %62 = arith.addf %60, %61 : vector<4x8x8xf32>
    %cst_22 = arith.constant dense<0xFF800000> : vector<4x8xf32>
    %63 = vector.multi_reduction <maximumf>, %62, %cst_22 [2] : vector<4x8x8xf32> to vector<4x8xf32>
    %64 = vector.shape_cast %63 : vector<4x8xf32> to vector<4x8x1xf32>
    %65 = vector.broadcast %64 : vector<4x8x1xf32> to vector<4x8x8xf32>
    %66 = arith.subf %62, %65 : vector<4x8x8xf32>
    %67 = math.exp %66 : vector<4x8x8xf32>
    %cst_23 = arith.constant dense<0.000000e+00> : vector<4x8xf32>
    %68 = vector.multi_reduction <add>, %67, %cst_23 [2] : vector<4x8x8xf32> to vector<4x8xf32>
    %69 = vector.shape_cast %68 : vector<4x8xf32> to vector<4x8x1xf32>
    %70 = tpu.reciprocal %69 {approx = true} : vector<4x8x1xf32> -> vector<4x8x1xf32>
    %71 = vector.broadcast %70 : vector<4x8x1xf32> to vector<4x8x8xf32>
    %72 = arith.mulf %67, %71 : vector<4x8x8xf32>
    %73 = arith.truncf %72 : vector<4x8x8xf32> to vector<4x8x8xbf16>
    %74 = vector.extract_strided_slice %21 {offsets = [0, 0, 16], sizes = [4, 8, 8], strides = [1, 1, 1]} : vector<4x8x128xbf16> to vector<4x8x8xbf16>
    "tpu.trace_start"() <{level = 10 : i32, message = "bqk,bkd->bqd"}> : () -> ()
    %cst_24 = arith.constant dense<0.000000e+00> : vector<4x8x8xf32>
    %75 = tpu.matmul %73, %74, %cst_24 {dimension_numbers = #tpu.dot_dimension_numbers<[2], [1], [1], [2], [0, 0, 0, 1, 1, 2], [0], [0]>} : vector<4x8x8xbf16>, vector<4x8x8xbf16>, vector<4x8x8xf32> -> vector<4x8x8xf32>
    "tpu.trace_stop"() : () -> ()
    %76 = vector.extract_strided_slice %19 {offsets = [0, 0, 24], sizes = [4, 8, 8], strides = [1, 1, 1]} : vector<4x8x128xbf16> to vector<4x8x8xbf16>
    %77 = vector.extract_strided_slice %20 {offsets = [0, 0, 24], sizes = [4, 8, 8], strides = [1, 1, 1]} : vector<4x8x128xbf16> to vector<4x8x8xbf16>
    "tpu.trace_start"() <{level = 10 : i32, message = "bqd,bkd->bqk"}> : () -> ()
    %cst_25 = arith.constant dense<0.000000e+00> : vector<4x8x8xf32>
    %78 = tpu.matmul %76, %77, %cst_25 {dimension_numbers = #tpu.dot_dimension_numbers<[2], [2], [1], [1], [0, 0, 0, 1, 1, 1], [0], [0]>} : vector<4x8x8xbf16>, vector<4x8x8xbf16>, vector<4x8x8xf32> -> vector<4x8x8xf32>
    "tpu.trace_stop"() : () -> ()
    %79 = vector.broadcast %1 : vector<4x1x8xf32> to vector<4x8x8xf32>
    %80 = arith.addf %78, %79 : vector<4x8x8xf32>
    %cst_26 = arith.constant dense<0xFF800000> : vector<4x8xf32>
    %81 = vector.multi_reduction <maximumf>, %80, %cst_26 [2] : vector<4x8x8xf32> to vector<4x8xf32>
    %82 = vector.shape_cast %81 : vector<4x8xf32> to vector<4x8x1xf32>
    %83 = vector.broadcast %82 : vector<4x8x1xf32> to vector<4x8x8xf32>
    %84 = arith.subf %80, %83 : vector<4x8x8xf32>
    %85 = math.exp %84 : vector<4x8x8xf32>
    %cst_27 = arith.constant dense<0.000000e+00> : vector<4x8xf32>
    %86 = vector.multi_reduction <add>, %85, %cst_27 [2] : vector<4x8x8xf32> to vector<4x8xf32>
    %87 = vector.shape_cast %86 : vector<4x8xf32> to vector<4x8x1xf32>
    %88 = tpu.reciprocal %87 {approx = true} : vector<4x8x1xf32> -> vector<4x8x1xf32>
    %89 = vector.broadcast %88 : vector<4x8x1xf32> to vector<4x8x8xf32>
    %90 = arith.mulf %85, %89 : vector<4x8x8xf32>
    %91 = arith.truncf %90 : vector<4x8x8xf32> to vector<4x8x8xbf16>
    %92 = vector.extract_strided_slice %21 {offsets = [0, 0, 24], sizes = [4, 8, 8], strides = [1, 1, 1]} : vector<4x8x128xbf16> to vector<4x8x8xbf16>
    "tpu.trace_start"() <{level = 10 : i32, message = "bqk,bkd->bqd"}> : () -> ()
    %cst_28 = arith.constant dense<0.000000e+00> : vector<4x8x8xf32>
    %93 = tpu.matmul %91, %92, %cst_28 {dimension_numbers = #tpu.dot_dimension_numbers<[2], [1], [1], [2], [0, 0, 0, 1, 1, 2], [0], [0]>} : vector<4x8x8xbf16>, vector<4x8x8xbf16>, vector<4x8x8xf32> -> vector<4x8x8xf32>
    %cst_29 = arith.constant 0.000000e+00 : f32
    "tpu.trace_stop"() : () -> ()
    %94 = vector.broadcast %cst_29 : f32 to vector<4x8x96xf32>
    %95 = tpu.concatenate %39, %57, %75, %93, %94 in 2 : vector<4x8x8xf32>, vector<4x8x8xf32>, vector<4x8x8xf32>, vector<4x8x8xf32>, vector<4x8x96xf32> -> vector<4x8x128xf32>
    %96 = vector.broadcast %0 : vector<4x8x1xf32> to vector<4x8x128xf32>
    %97 = arith.mulf %95, %96 : vector<4x8x128xf32>
    %98 = arith.addf %16, %97 : vector<4x8x128xf32>
    %99 = vector.shape_cast %98 : vector<4x8x128xf32> to vector<32x128xf32>
    %100 = arith.truncf %99 : vector<32x128xf32> to vector<32x128xbf16>
    %cst_30 = arith.constant dense<0.000000e+00> : vector<32x128xf32>
    %101 = tpu.matmul %100, %10, %cst_30 {dimension_numbers = #tpu.dot_dimension_numbers<[1], [0], [0], [1], [0, 0, 1, 1], [], []>} : vector<32x128xbf16>, vector<128x128xbf16>, vector<32x128xf32> -> vector<32x128xf32>
    %102 = vector.shape_cast %101 : vector<32x128xf32> to vector<4x8x128xf32>
    %cst_31 = arith.constant 0.000000e+00 : f32
    %103 = vector.broadcast %cst_31 : f32 to vector<4x8x128xf32>
    %104 = arith.maximumf %102, %103 : vector<4x8x128xf32>
    %105 = vector.broadcast %0 : vector<4x8x1xf32> to vector<4x8x128xf32>
    %106 = arith.mulf %104, %105 : vector<4x8x128xf32>
    %107 = arith.addf %98, %106 : vector<4x8x128xf32>
    %c0_32 = arith.constant 0 : index
    %c0_33 = arith.constant 0 : index
    %c0_34 = arith.constant 0 : index
    %108 = vector.load %arg8[%c0_32, %c0_33, %c0_34] : memref<4x8x128xf32, #tpu.memory_space<vmem>>, vector<4x8x128xf32>
    tpu.vector_store %arg8[%c0_32, %c0_33, %c0_34], %107 {strides = array<i32>} : memref<4x8x128xf32, #tpu.memory_space<vmem>>, vector<4x8x128xf32>,
    %c1_i32 = arith.constant 1 : i32
    %109 = arith.cmpi eq, %arg1, %c1_i32 : i32
    %110 = arith.extui %109 : i1 to i32
    %c0_i32_35 = arith.constant 0 : i32
    %111 = arith.cmpi ne, %110, %c0_i32_35 : i32
    scf.if %111 {
      %c0_36 = arith.constant 0 : index
      %c0_37 = arith.constant 0 : index
      %c0_38 = arith.constant 0 : index
      %112 = vector.load %arg7[%c0_36, %c0_37, %c0_38] : memref<4x8x128xf32, #tpu.memory_space<vmem>>, vector<4x8x128xf32>
      tpu.vector_store %arg7[%c0_36, %c0_37, %c0_38], %107 {strides = array<i32>} : memref<4x8x128xf32, #tpu.memory_space<vmem>>, vector<4x8x128xf32>,
    } else {
    }
    return
  }
  func.func @transform_0(%arg0: i32, %arg1: i32) -> (i32, i32, i32) {
    %c0_i32 = arith.constant 0 : i32
    %c0_i32_0 = arith.constant 0 : i32
    %c0_i32_1 = arith.constant 0 : i32
    return %arg0, %c0_i32, %c0_i32_0 : i32, i32, i32
  }
  func.func @transform_1(%arg0: i32, %arg1: i32) -> (i32, i32, i32) {
    %c0_i32 = arith.constant 0 : i32
    %c0_i32_0 = arith.constant 0 : i32
    %c0_i32_1 = arith.constant 0 : i32
    return %arg0, %c0_i32, %c0_i32_0 : i32, i32, i32
  }
  func.func @transform_2(%arg0: i32, %arg1: i32) -> (i32, i32, i32) {
    %c0_i32 = arith.constant 0 : i32
    %c0_i32_0 = arith.constant 0 : i32
    %c0_i32_1 = arith.constant 0 : i32
    return %arg0, %c0_i32, %c0_i32_0 : i32, i32, i32
  }
  func.func @transform_3(%arg0: i32, %arg1: i32) -> (i32, i32, i32) {
    %c0_i32 = arith.constant 0 : i32
    %c0_i32_0 = arith.constant 0 : i32
    %c0_i32_1 = arith.constant 0 : i32
    %c0_i32_2 = arith.constant 0 : i32
    return %c0_i32, %c0_i32_0, %c0_i32_1 : i32, i32, i32
  }
  func.func @transform_4(%arg0: i32, %arg1: i32) -> (i32, i32, i32) {
    %c0_i32 = arith.constant 0 : i32
    %c0_i32_0 = arith.constant 0 : i32
    %c0_i32_1 = arith.constant 0 : i32
    %c0_i32_2 = arith.constant 0 : i32
    return %c0_i32, %c0_i32_0, %c0_i32_1 : i32, i32, i32
  }
  func.func @transform_5(%arg0: i32, %arg1: i32) -> (i32, i32, i32) {
    %c0_i32 = arith.constant 0 : i32
    %c0_i32_0 = arith.constant 0 : i32
    %c0_i32_1 = arith.constant 0 : i32
    return %arg0, %c0_i32, %c0_i32_0 : i32, i32, i32
  }
}

</mosaic_0001>

<bundles_post_ra>
// kernel: tpu_custom_call.1
= control target key start
LH: loop header
LB: loop body
LE: loop exit
PB: predicated region body
PF: predicated region fallthrough
CT: control target
= control target key end

     0   :  { %10 = vsyncpa [#allocation4], 0  ;;  %s4089_s0 = inlined_call_operand.vmem [shape: f32[4,8,1], index: 0, kind: input, shape index: {}]   ;;  %s4090_s1 = inlined_call_operand.vmem [shape: f32[4,1,8], index: 1, kind: input, shape index: {}]   ;;  %s4091_s2 = inlined_call_operand.vmem [shape: f32[4,8,128], index: 2, kind: input, shape index: {}]   ;;  %s4092_s3 = inlined_call_operand.hbm [shape: bf16[2,128,384], index: 3, kind: input, shape index: {}]   ;;  %s4093_s4 = inlined_call_operand.hbm [shape: bf16[2,128,128], index: 4, kind: input, shape index: {}]   ;;  %s4094_s5 = inlined_call_operand.hbm [shape: f32[4,8,128], index: 5, kind: output, shape index: {}]  }
   0x1   :  { %11 = vsyncpa [#allocation7], 0 }
   0x2   :  { %12 = vsyncpa [#allocation5], 0  ;;  %s3499_s18 = smov 0   ;;  %s3501_s19 = smov 0  }
   0x3   :  { %s3503_s20 = smov 0  }
   0x4 LB: > { %s2759_s21 = sadd.s32 4294967295, %s3449_s20   ;;  %s27_s22 = sadd.s32 1, %s3445_s19  ;;  %s3449_s20 = sphi %s3503_s20, %s18_s20   ;;  %s3445_s19 = sphi %s3501_s19, %s4100_s19   ;;  %s3441_s18 = sphi %s3499_s18, %s4099_s18  }
   0x5   : > { %p28_p0 = scmp.ge.s32.totalorder %s27_s22, 2  ;;  %p2760_p1 = scmp.ge.s32.totalorder %s3449_s20, 1 }
   0x6   : > { %p181_p2 = scmp.lt.s32.totalorder %s3449_s20, 3  ;;  %p3526_p4 = scmp.eq.s32.totalorder %s2759_s21, 0 }
   0x7   : > { %s4102_s22 = smov (%p28_p0, %s27_s22), 0  ;;  %s3451_s25 = smov [#allocation3]  }
   0x8   : > { %p3520_p3 = pnand %p2760_p1, %p181_p2  ;;  %s219_s26 = sshll.u32 %s3451_s25, 4  ;;  %s220_s26 = int_to_ptr.vmem [resolvable:$true] %s219_s26 }
   0x9   : > { %s3452_s28 = smov [#allocation6]   ;;  %s3350_s30 = scalar_lea.vmem %s220_s26, 6144 }
   0xa   : > { %p3176_p5 = pneg %p3520_p3  ;;  %s232_s29 = sshll.u32 %s3452_s28, 4  ;;  %s233_s29 = int_to_ptr.vmem [resolvable:$true] %s232_s29 }
   0xb   : > { %p3351_p8 = scmp.ne.s32.totalorder %s220_s26, %s3350_s30  ;;  %p3358_p11 = scmp.lt.s32.totalorder %s220_s26, %s220_s26 }
   0xc   : > { %p3534_p6 = pnand %p3526_p4, %p3176_p5  ;;  %p3359_p12 = scmp.lt.s32.totalorder %s3350_s30, %s3350_s30 }
   0xe   : > { %p3341_p7 = pneg %p3534_p6  ;;  %p3360_p13 = por %p3359_p12, %p3358_p11 }
  0x10   : > { %p3353_p9 = pnand %p3351_p8, %p3341_p7 }
  0x12   : > { %p3354_p10 = pneg %p3353_p9 }
  0x14   : > { %p3361_p0 = pnand %p3360_p13, %p3354_p10 }
  0x16   : > { %3364 = shalt.err (!%p3361_p0)
}
  0x17   : > { %s3453_s6 = smov 192   ;;  %s3454_s7 = smov 12  }
  0x18   : > { %3179 = dma.hbm_to_vmem [thread:$0]  (!%p3534_p6), %s4092_s3, 6144, %s220_s26, [#allocation4], %s3453_s6, %s3453_s6, %s3454_s7  }
  0x19   : > { %s3376_s10 = scalar_lea.vmem %s233_s29, 2048  ;;  %p3384_p8 = scmp.lt.s32.totalorder %s233_s29, %s233_s29 }
  0x1a   : > { %p3377_p1 = scmp.ne.s32.totalorder %s233_s29, %s3376_s10  ;;  %p3385_p9 = scmp.lt.s32.totalorder %s3376_s10, %s3376_s10 }
  0x1c   : > { %p3379_p2 = pnand %p3377_p1, %p3341_p7  ;;  %p3386_p11 = por %p3385_p9, %p3384_p8 }
  0x1e   : > { %p3380_p5 = pneg %p3379_p2 }
  0x20   : > { %p3387_p10 = pnand %p3386_p11, %p3380_p5 }
  0x22   : > { %3390 = shalt.err (!%p3387_p10)
}
  0x23   : > { %s3455_s11 = smov 64   ;;  %s3456_s12 = smov 4  }
  0x24   : > { %3182 = dma.hbm_to_vmem [thread:$0]  (!%p3534_p6), %s4093_s4, 2048, %s233_s29, [#allocation7], %s3455_s11, %s3455_s11, %s3456_s12  }
  0x25   : > { %248 = sbr.rel (%p3520_p3) target bundleno = 3256 (0xcb8), region = 40 }
  0x2a   : > { %3428 = dma.done.wait (%p3526_p4), [#allocation4], 6144  }
  0x2b   : > { %3430 = vsyncadd (%p3526_p4), [#allocation4], 4294961152 }
  0x2c   : > { %3432 = dma.done.wait (%p3526_p4), [#allocation7], 2048  }
  0x2d   : > { %3434 = vsyncadd (%p3526_p4), [#allocation7], 4294965248  ;;  %v3569_v0 = vld [vmem:[%s4089_s0] sm:$0xff]  ;;  %v3574_v1 = vld [vmem:[%s4089_s0 + $0x8] sm:$0xff]  ;;  %p2769_p3 = scmp.ne.s32.totalorder %s3441_s18, 0 }
  0x2e   : > { %v3579_v2 = vld [vmem:[%s4089_s0 + $0x10] sm:$0xff]  ;;  %v3584_v3 = vld [vmem:[%s4089_s0 + $0x18] sm:$0xff]  ;;  %v3589_v4 = vld [vmem:[%s4090_s1] ss:$0 sm:$0xff] }
  0x2f   : > { %v3594_v5 = vld [vmem:[%s4090_s1 + $0x1] ss:$0 sm:$0xff]  ;;  %v3599_v6 = vld [vmem:[%s4090_s1 + $0x2] ss:$0 sm:$0xff]  ;;  %v3604_v7 = vld [vmem:[%s4090_s1 + $0x3] ss:$0 sm:$0xff] }
  0x30   : > { %314 = sbr.rel (%p2769_p3) target bundleno = 186 (0xba), region = 52 }
  0x35   : > { %v3457_v8 = vmov 0   ;;  %v317_v9 = vld [vmem:[%s4091_s2 + $0x10] sm:$0xff]  ;;  %v315_v10 = vld [vmem:[%s4091_s2] sm:$0xff]  ;;  %v318_v15 = vld [vmem:[%s4091_s2 + $0x18] sm:$0xff] }
  0x36   : > { %3232 = vset.pattern.permute.xlu1 %v3457_v8  ;;  %3231 = vset.pattern.permute.xlu0 %v3457_v8  ;;  %v316_v16 = vld [vmem:[%s4091_s2 + $0x8] sm:$0xff] }
  0x37   : > { %331 = vperm.xlu1 %3232, %v3579_v2   ;;  %321 = vperm.xlu0 %3231, %v3569_v0  }
  0x3b   : > { %336 = vperm.xlu1 %3232, %v3584_v3   ;;  %326 = vperm.xlu0 %3231, %v3574_v1  }
  0xb2   : > { %v332_v11 = vpop.permute.xlu1 %331  ;;  %v322_v12 = vpop.permute.xlu0 %321 }
  0xb3   : > { %v341_v13 = vmul.f32 %v332_v11, %v317_v9  ;;  %v339_v14 = vmul.f32 %v322_v12, %v315_v10 }
  0xb5   : > { %345 = vst [vmem:[#allocation2 + $0x18] sm:$0xff] %v341_v13  ;;  %343 = vst [vmem:[#allocation2 + $0x10] sm:$0xff] %v339_v14 }
  0xb6   : > { %v337_v17 = vpop.permute.xlu1 %336  ;;  %v327_v18 = vpop.permute.xlu0 %326 }
  0xb7   : > { %v342_v19 = vmul.f32 %v337_v17, %v318_v15  ;;  %v340_v20 = vmul.f32 %v327_v18, %v316_v16 }
  0xb9   : > { %346 = vst [vmem:[#allocation2 + $0x8] sm:$0xff] %v342_v19  ;;  %344 = vst [vmem:[#allocation2] sm:$0xff] %v340_v20 }
  0xba PF: > { %s2846_s25 = smul.u32 192, %s3441_s18  ;;  %v3458_v23 = vmov 0   ;;  %v3459_v51 = vmov 0.0   ;;  %vm3460_vm0 = vmmov 0   ;;  %vm673_vm1 = vcmask 64512   ;;  %s3461_s27 = smov 120  }
  0xbb   : > { %567 = vmatprep.mubr.bf16.mxu0 %v3458_v23  ;;  %3233 = vset.pattern.permute.xlu0 %v3458_v23  ;;  %vm909_vm2 = vcmask 1043456   ;;  %s3462_s28 = smov 112   ;;  %s3463_s24 = smov 104   ;;  %vm2480_vm3 = vcmask 195584   ;;  %vm2475_vm4 = vcmask 130048   ;;  %vm2485_vm5 = vcmask 261120  }
  0xbc   : > { %v401_v21 = vld [vmem:[#allocation2 + $0x10] sm:$0xff]  ;;  %3234 = vset.pattern.permute.xlu1 %v3458_v23  ;;  %s3624_s26 = scalar_lea.vmem [#allocation3], %s2846_s25  ;;  %v403_v46 = vld [vmem:[#allocation2 + $0x18] sm:$0xff]  ;;  %s3464_s29 = smov 8  }
  0xbd   : > { %v3235_v25 = vld [vmem:[%s3624_s26 + $0xac] ss:$12 sps:$4 sm:$0xff]   ;;  %v3237_v26 = vld [vmem:[%s3624_s26 + $0xa8] ss:$12 sps:$4 sm:$0xff]   ;;  %v3240_v28 = vld [vmem:[%s3624_s26 + $0x90] ss:$12 sps:$4 sm:$0xff]  }
  0xbe   : > { %535 = vmatprep.subr.bf16.mxu0 %v3235_v25  ;;  %v3238_v27 = vld [vmem:[%s3624_s26 + $0x94] ss:$12 sps:$4 sm:$0xff]   ;;  %v3241_v29 = vld [vmem:[%s3624_s26 + $0x7c] ss:$12 sps:$4 sm:$0xff]   ;;  %v3243_v30 = vld [vmem:[%s3624_s26 + $0x78] ss:$12 sps:$4 sm:$0xff]  }
  0xbf   : > { %536 = vmatpush1.bf16.msra.mxu0 %v3237_v26  ;;  %v3244_v31 = vld [vmem:[%s3624_s26 + $0x64] ss:$12 sps:$4 sm:$0xff]   ;;  %v3246_v32 = vld [vmem:[%s3624_s26 + $0x60] ss:$12 sps:$4 sm:$0xff]   ;;  %v3249_v36 = vld [vmem:[%s3624_s26 + $0x48] ss:$12 sps:$4 sm:$0xff]  }
  0xc0   : > { %v402_v22 = vld [vmem:[#allocation2] sm:$0xff]  ;;  %537 = vmatprep.subr.bf16.mxu0 %v3238_v27  ;;  %v3247_v33 = vld [vmem:[%s3624_s26 + $0x4c] ss:$12 sps:$4 sm:$0xff]   ;;  %v3259_v34 = vld [vmem:[%s3624_s26 + $0xb0] ss:$12 sps:$4 sm:$0xff]   ;;  %s3465_s30 = smov 16  }
  0xc1   : > { %v405_v24 = vpack.c.bf16 %v402_v22, %v401_v21  ;;  %v3260_v35 = vld [vmem:[%s3624_s26 + $0x98] ss:$12 sps:$4 sm:$0xff]   ;;  %2932 = vmatprep.subr.bf16.mxu1 %v3259_v34  ;;  %v3250_v37 = vld [vmem:[%s3624_s26 + $0x34] ss:$12 sps:$4 sm:$0xff]   ;;  %v3252_v39 = vld [vmem:[%s3624_s26 + $0x30] ss:$12 sps:$4 sm:$0xff]  }
  0xc2   : > { %2933 = vmatpush3.bf16.msra.mxu1 %v3259_v34  ;;  %v3261_v38 = vld [vmem:[%s3624_s26 + $0x80] ss:$12 sps:$4 sm:$0xff]   ;;  %v3262_v40 = vld [vmem:[%s3624_s26 + $0x68] ss:$12 sps:$4 sm:$0xff]   ;;  %v3255_v42 = vld [vmem:[%s3624_s26 + $0x18] ss:$12 sps:$4 sm:$0xff]  }
  0xc3   : > { %2948 = vmatprep.mubr.bf16.mxu1 %v405_v24  ;;  %538 = vmatpush1.bf16.msra.mxu0 %v3240_v28  ;;  %v3253_v41 = vld [vmem:[%s3624_s26 + $0x1c] ss:$12 sps:$4 sm:$0xff]   ;;  %v3256_v44 = vld [vmem:[%s3624_s26 + $0x4] ss:$12 sps:$4 sm:$0xff]   ;;  %v3258_v45 = vld [vmem:[%s3624_s26] ss:$12 sps:$4 sm:$0xff]  }
  0xc4   : > { %539 = vmatprep.subr.bf16.mxu0 %v3241_v29  ;;  %2934 = vmatprep.subr.bf16.mxu1 %v3260_v35  ;;  %v3263_v43 = vld [vmem:[%s3624_s26 + $0x50] ss:$12 sps:$4 sm:$0xff]   ;;  %v404_v47 = vld [vmem:[#allocation2 + $0x8] sm:$0xff]  ;;  %v3264_v49 = vld [vmem:[%s3624_s26 + $0x38] ss:$12 sps:$4 sm:$0xff]   ;;  %s3466_s6 = smov 24  }
  0xc5   : > { %v406_v48 = vpack.c.bf16 %v404_v47, %v403_v46  ;;  %v3265_v50 = vld [vmem:[%s3624_s26 + $0x20] ss:$12 sps:$4 sm:$0xff]   ;;  %v3266_v52 = vld [vmem:[%s3624_s26 + $0x8] ss:$12 sps:$4 sm:$0xff]   ;;  %s2847_s7 = sshll.u32 %s3441_s18, 6  ;;  %p2841_p4 = scmp.ne.s32.totalorder %s3441_s18, 1 }
  0xc6   : > { %2935 = vmatpush3.bf16.msra.mxu1 %v3260_v35  ;;  %s384_s8 = scalar_lea.vmem [#allocation6], %s2847_s7 }
  0xc7   : > { %540 = vmatpush1.bf16.msra.mxu0 %v3243_v30  ;;  %2936 = vmatprep.subr.bf16.mxu1 %v3261_v38 }
  0xc8   : > { %541 = vmatprep.subr.bf16.mxu0 %v3244_v31 }
  0xca   : > { %2937 = vmatpush3.bf16.msra.mxu1 %v3261_v38 }
  0xcb   : > { %542 = vmatpush1.bf16.msra.mxu0 %v3246_v32  ;;  %2938 = vmatprep.subr.bf16.mxu1 %v3262_v40 }
  0xcc   : > { %543 = vmatprep.subr.bf16.mxu0 %v3247_v33 }
  0xce   : > { %2939 = vmatpush3.bf16.msra.mxu1 %v3262_v40 }
  0xcf   : > { %544 = vmatpush1.bf16.msra.mxu0 %v3249_v36  ;;  %2940 = vmatprep.subr.bf16.mxu1 %v3263_v43 }
  0xd0   : > { %545 = vmatprep.subr.bf16.mxu0 %v3250_v37 }
  0xd2   : > { %2941 = vmatpush3.bf16.msra.mxu1 %v3263_v43 }
  0xd3   : > { %546 = vmatpush1.bf16.msra.mxu0 %v3252_v39  ;;  %2942 = vmatprep.subr.bf16.mxu1 %v3264_v49 }
  0xd4   : > { %547 = vmatprep.subr.bf16.mxu0 %v3253_v41 }
  0xd6   : > { %2943 = vmatpush3.bf16.msra.mxu1 %v3264_v49 }
  0xd7   : > { %548 = vmatpush1.bf16.msra.mxu0 %v3255_v42  ;;  %2944 = vmatprep.subr.bf16.mxu1 %v3265_v50 }
  0xd8   : > { %549 = vmatprep.subr.bf16.mxu0 %v3256_v44 }
  0xda   : > { %2945 = vmatpush3.bf16.msra.mxu1 %v3265_v50 }
  0xdb   : > { %550 = vmatpush1.bf16.msra.mxu0 %v3258_v45  ;;  %2946 = vmatprep.subr.bf16.mxu1 %v3266_v52 }
  0xdc   : > { %2952 = vmatprep.subr.bf16.mxu0 %v3459_v51 }
  0xde   : > { %568 = vmatmul.mubr.bf16.vlgmr.msra.gmra.mxu0 %v405_v24  ;;  %2947 = vmatpush3.bf16.msra.mxu1 %v3266_v52 }
  0xdf   : > { %577 = vmatprep.mubr.bf16.mxu0 %v3458_v23  ;;  %2964 = vmatprep.subr.bf16.mxu1 %v3459_v51 }
  0xe1   : > { %2949 = vmatmul.mubr.bf16.vlgmr.msra.gmra.mxu1 %v406_v48 }
  0xe2   : > { %2966 = vmatprep.mubr.msk.bf16.mxu1 %vm3460_vm0, %v3459_v51 }
  0xe6   : > { %578 = vmatmul.mubr.bf16.gmra.mxu0 %v406_v48 }
  0xe7   : > { %2954 = vmatprep.mubr.msk.bf16.mxu0 %vm3460_vm0, %v3459_v51 }
 0x19e   : > { %v3656_v53 = vpop.f32.mrf.mxu0 }
 0x19f   : > { %v3671_v62 = vpack.c.bf16 %v3656_v53, %v3656_v53 }
 0x1a0   : > { %v571_v54 = vpop.f32.mrf.mxu0 }
 0x1a1   : > { %v3658_v55 = vpack.c.bf16 %v571_v54, %v571_v54  ;;  %v3716_v17 = vpop.f32.mrf.mxu1 }
 0x1a2   : > { %v3660_v56 = vpop.f32.mrf.mxu0 }
 0x1a3   : > { %v678_v57 = vsel %vm673_vm1, %v3658_v55, 0  ;;  %v3695_v14 = vpack.c.bf16 %v3660_v56, %v3660_v56  ;;  %v622_v18 = vpop.f32.mrf.mxu1 }
 0x1a4   : > { %v575_v58 = vpop.f32.mrf.mxu0  ;;  %2953 = vmatpush3.bf16.xpose.msra.mxu0 %v678_v57  ;;  %v3720_v21 = vpack.c.bf16 %v622_v18, %v622_v18 }
 0x1a5   : > { %2958 = vmatprep.subr.bf16.mxu0 %v3459_v51  ;;  %v3667_v60 = vpack.c.bf16 %v575_v58, %v575_v58  ;;  %v3718_v19 = vpop.f32.mrf.mxu1 }
 0x1a6   : > { %v3665_v59 = vpop.f32.mrf.mxu0  ;;  %v911_v23 = vsel %vm909_vm2, %v3720_v21, 0 }
 0x1a7   : > { %v724_v9 = vsel %vm673_vm1, %v3667_v60, 0  ;;  %v3691_v13 = vpack.c.bf16 %v3665_v59, %v3665_v59  ;;  %v625_v20 = vpop.f32.mrf.mxu1 }
 0x1a8   : > { %v581_v61 = vpop.f32.mrf.mxu0  ;;  %v3722_v22 = vpack.c.bf16 %v625_v20, %v625_v20 }
 0x1a9   : > { %v3673_v63 = vpack.c.bf16 %v581_v61, %v581_v61 }
 0x1aa   : > { %v3675_v8 = vpop.f32.mrf.mxu0  ;;  %v957_v24 = vsel %vm909_vm2, %v3722_v22, 0 }
 0x1ab   : > { %2955 = vmatmul.mubr.msk.bf16.vlgmr.msra.gmra.mxu0 %vm673_vm1, %v3671_v62  ;;  %v770_v10 = vsel %vm673_vm1, %v3673_v63, 0  ;;  %v3710_v16 = vpack.c.bf16 %v3675_v8, %v3675_v8 }
 0x1ac   : > { %2959 = vmatpush3.bf16.xpose.msra.mxu0 %v724_v9  ;;  %2965 = vmatpush3.bf16.xpose.msra.mxu1 %v770_v10  ;;  %v585_v11 = vpop.f32.mrf.mxu0 }
 0x1ad   : > { %v3683_v12 = vpack.c.bf16 %v585_v11, %v585_v11  ;;  %2960 = vmatprep.mubr.msk.bf16.mxu0 %vm3460_vm0, %v3459_v51  ;;  %2970 = vmatprep.subr.bf16.mxu0 %v3459_v51 }
 0x1ae   : > { %2976 = vmatprep.subr.bf16.mxu1 %v3459_v51 }
 0x1af   : > { %v816_v15 = vsel %vm673_vm1, %v3683_v12, 0 }
 0x1b3   : > { %2961 = vmatmul.mubr.msk.bf16.vlgmr.msra.gmra.mxu0 %vm673_vm1, %v3695_v14  ;;  %2967 = vmatmul.mubr.msk.bf16.vlgmr.msra.gmra.mxu1 %vm673_vm1, %v3691_v13 }
 0x1b4   : > { %2971 = vmatpush3.bf16.xpose.msra.mxu0 %v816_v15  ;;  %2972 = vmatprep.mubr.msk.bf16.mxu0 %vm3460_vm0, %v3459_v51 }
 0x1b5   : > { %2982 = vmatprep.subr.bf16.mxu0 %v3459_v51  ;;  %2978 = vmatprep.mubr.msk.bf16.mxu1 %vm3460_vm0, %v3459_v51 }
 0x1b6   : > { %2977 = vmatpush3.bf16.msra.mxu1 %v911_v23 }
 0x1b7   : > { %2988 = vmatprep.subr.bf16.mxu1 %v3459_v51 }
 0x1bb   : > { %2973 = vmatmul.mubr.msk.bf16.vlgmr.msra.gmra.mxu0 %vm673_vm1, %v3710_v16 }
 0x1bc   : > { %2984 = vmatprep.mubr.msk.bf16.mxu0 %vm3460_vm0, %v3459_v51  ;;  %2983 = vmatpush3.bf16.msra.mxu0 %v957_v24 }
 0x1bd   : > { %2994 = vmatprep.subr.bf16.mxu0 %v3459_v51 }
 0x26b   : > { %v714_v25 = vpop.f32.mrf.mxu0 }
 0x26c   : > { %v715_v26 = vadd.f32 %v3589_v4, %v714_v25 }
 0x26d   : > { %v2956_v27 = vpop.f32.mrf.mxu0 }
 0x26e   : > { %v858_v28 = vsel %vm673_vm1, %v715_v26, -inf }
 0x26f   : > { %859 = vmax.xlane.f32.xlu0 %v858_v28  ;;  %v717_v29 = vpop.f32.mrf.mxu0 }
 0x271   : > { %v2957_v30 = vpop.f32.mrf.mxu0 }
 0x273   : > { %v760_v31 = vpop.f32.mrf.mxu0  ;;  %v806_v32 = vpop.f32.mrf.mxu1 }
 0x274   : > { %v761_v33 = vadd.f32 %v3594_v5, %v760_v31  ;;  %v807_v34 = vadd.f32 %v3599_v6, %v806_v32 }
 0x275   : > { %v2962_v35 = vpop.f32.mrf.mxu0  ;;  %v2968_v36 = vpop.f32.mrf.mxu1 }
 0x276   : > { %v864_v37 = vsel %vm673_vm1, %v807_v34, -inf  ;;  %v861_v38 = vsel %vm673_vm1, %v761_v33, -inf }
 0x277   : > { %865 = vmax.xlane.f32.xlu1 %v864_v37  ;;  %862 = vmax.xlane.f32.xlu0 %v861_v38  ;;  %v763_v39 = vpop.f32.mrf.mxu0  ;;  %v809_v40 = vpop.f32.mrf.mxu1 }
 0x279   : > { %v2963_v41 = vpop.f32.mrf.mxu0  ;;  %v2969_v42 = vpop.f32.mrf.mxu1 }
 0x27b   : > { %v852_v43 = vpop.f32.mrf.mxu0 }
 0x27c   : > { %v853_v44 = vadd.f32 %v3604_v7, %v852_v43 }
 0x27d   : > { %v2974_v45 = vpop.f32.mrf.mxu0 }
 0x27e   : > { %v867_v46 = vsel %vm673_vm1, %v853_v44, -inf }
 0x27f   : > { %868 = vmax.xlane.f32.xlu1 %v867_v46  ;;  %v855_v47 = vpop.f32.mrf.mxu0 }
 0x281   : > { %v2975_v48 = vpop.f32.mrf.mxu0 }
 0x2f8   : > { %v860_v49 = vpop.xlane.xlu0 %859 }
 0x2f9   : > { %v870_v50 = vsub.f32 %v715_v26, %v860_v49 }
 0x2fb   : > { %v874_v52 = vmul.f32 1.442695, %v870_v50 }
 0x2fd   : > { %3275 = vpow2.f32 %v874_v52 }
 0x300   : > { %v866_v54 = vpop.xlane.xlu1 %865  ;;  %v863_v57 = vpop.xlane.xlu0 %862 }
 0x301   : > { %v872_v58 = vsub.f32 %v807_v34, %v866_v54  ;;  %v871_v61 = vsub.f32 %v761_v33, %v863_v57  ;;  %v3760_v34 = vpack.c.bf16 %v3716_v17, %v3716_v17  ;;  %v3770_v17 = vpack.c.bf16 %v3718_v19, %v3718_v19 }
 0x303   : > { %v878_v9 = vmul.f32 1.442695, %v872_v58  ;;  %v876_v10 = vmul.f32 1.442695, %v871_v61  ;;  %v1003_v37 = vsel %vm909_vm2, %v3760_v34, 0  ;;  %v1049_v47 = vsel %vm909_vm2, %v3770_v17, 0 }
 0x305   : > { %3277 = vpow2.f32 %v878_v9 }
 0x306   : > { %3279 = vpow2.f32 %v876_v10 }
 0x308   : > { %v869_v25 = vpop.xlane.xlu1 %868 }
 0x309   : > { %v873_v26 = vsub.f32 %v853_v44, %v869_v25 }
 0x30a   : > { %v3276_v11 = vpop.eup %3275 }
 0x30b   : > { %v882_v15 = vsel %vm673_vm1, %v3276_v11, 0.0  ;;  %v880_v27 = vmul.f32 1.442695, %v873_v26 }
 0x30c   : > { %883 = vadd.xlane.f32.xlu0 %v882_v15 }
 0x30d   : > { %3281 = vpow2.f32 %v880_v27 }
 0x312   : > { %v3278_v18 = vpop.eup %3277 }
 0x313   : > { %v3280_v20 = vpop.eup %3279  ;;  %v888_v23 = vsel %vm673_vm1, %v3278_v18, 0.0 }
 0x314   : > { %889 = vadd.xlane.f32.xlu0 %v888_v23  ;;  %v885_v24 = vsel %vm673_vm1, %v3280_v20, 0.0 }
 0x315   : > { %886 = vadd.xlane.f32.xlu1 %v885_v24 }
 0x31a   : > { %v3282_v28 = vpop.eup %3281 }
 0x31b   : > { %v891_v29 = vsel %vm673_vm1, %v3282_v28, 0.0 }
 0x326   : > { %1147 = vrot.lane.b32.xlu1 %v3667_v60, %s3461_s27 }
 0x32a   : > { %1092 = vrot.lane.b32.xlu1 %v3671_v62, %s3461_s27  ;;  %1095 = vrot.lane.b32.xlu0 %v3658_v55, %s3461_s27 }
 0x32e   : > { %1199 = vrot.lane.b32.xlu0 %v3673_v63, %s3461_s27 }
 0x332   : > { %1196 = vrot.lane.b32.xlu0 %v3691_v13, %s3461_s27 }
 0x34e   : > { %892 = vadd.xlane.f32.xlu1 %v891_v29 }
 0x35f   : > { %1144 = vrot.lane.b32.xlu1 %v3695_v14, %s3461_s27 }
 0x363   : > { %1251 = vrot.lane.b32.xlu1 %v3683_v12, %s3461_s27 }
 0x367   : > { %1248 = vrot.lane.b32.xlu1 %v3710_v16, %s3461_s27 }
 0x395   : > { %v884_v30 = vpop.xlane.xlu0 %883 }
 0x396   : > { %3283 = vrcp.f32 %v884_v30 }
 0x39d   : > { %v890_v31 = vpop.xlane.xlu0 %889 }
 0x39e   : > { %3285 = vrcp.f32 %v890_v31  ;;  %v887_v32 = vpop.xlane.xlu1 %886 }
 0x39f   : > { %3287 = vrcp.f32 %v887_v32 }
 0x3a1   : > { %v1096_v41 = vpop.permute.xlu0 %1095 }
 0x3a2   : > { %v1101_v45 = vsel %vm673_vm1, %v1096_v41, 0  ;;  %v1148_v46 = vpop.permute.xlu1 %1147 }
 0x3a3   : > { %v3284_v33 = vpop.eup %3283  ;;  %v1153_v9 = vsel %vm673_vm1, %v1148_v46, 0 }
 0x3a4   : > { %v898_v35 = vmul.f32 %v3284_v33, %v3276_v11 }
 0x3a5   : > { %v1200_v19 = vpop.permute.xlu0 %1199 }
 0x3a6   : > { %v902_v36 = vpack.c.bf16 %v898_v35, %v898_v35  ;;  %v1093_v48 = vpop.permute.xlu1 %1092  ;;  %v1205_v49 = vsel %vm673_vm1, %v1200_v19, 0 }
 0x3a8   : > { %2979 = vmatmul.mubr.msk.bf16.vlgmr.msra.gmra.mxu1 %vm673_vm1, %v902_v36 }
 0x3a9   : > { %2989 = vmatpush3.bf16.msra.mxu1 %v1003_v37  ;;  %2990 = vmatprep.mubr.msk.bf16.mxu1 %vm3460_vm0, %v3459_v51  ;;  %v1197_v50 = vpop.permute.xlu0 %1196 }
 0x3aa   : > { %3000 = vmatprep.subr.bf16.mxu1 %v3459_v51 }
 0x3ab   : > { %v3286_v38 = vpop.eup %3285 }
 0x3ac   : > { %v3288_v39 = vpop.eup %3287  ;;  %v900_v40 = vmul.f32 %v3286_v38, %v3278_v18 }
 0x3ad   : > { %v899_v42 = vmul.f32 %v3288_v39, %v3280_v20 }
 0x3ae   : > { %v904_v43 = vpack.c.bf16 %v900_v40, %v900_v40 }
 0x3af   : > { %v903_v44 = vpack.c.bf16 %v899_v42, %v899_v42 }
 0x3b0   : > { %2991 = vmatmul.mubr.msk.bf16.vlgmr.msra.gmra.mxu1 %vm673_vm1, %v904_v43 }
 0x3b1   : > { %2985 = vmatmul.mubr.msk.bf16.vlgmr.msra.gmra.mxu0 %vm673_vm1, %v903_v44  ;;  %3001 = vmatpush3.bf16.xpose.msra.mxu1 %v1101_v45 }
 0x3b2   : > { %2995 = vmatpush3.bf16.msra.mxu0 %v1049_v47  ;;  %3002 = vmatprep.mubr.msk.bf16.mxu1 %vm3460_vm0, %v3459_v51 }
 0x3b3   : > { %3012 = vmatprep.subr.bf16.mxu1 %v3459_v51  ;;  %2996 = vmatprep.mubr.msk.bf16.mxu0 %vm3460_vm0, %v3459_v51 }
 0x3b4   : > { %3006 = vmatprep.subr.bf16.mxu0 %v3459_v51 }
 0x3b8   : > { %3003 = vmatmul.mubr.msk.bf16.vlgmr.msra.gmra.mxu1 %vm673_vm1, %v1093_v48 }
 0x3b9   : > { %3013 = vmatpush3.bf16.xpose.msra.mxu1 %v1205_v49  ;;  %3014 = vmatprep.mubr.msk.bf16.mxu1 %vm3460_vm0, %v3459_v51 }
 0x3ba   : > { %3024 = vmatprep.subr.bf16.mxu1 %v3459_v51 }
 0x3c0   : > { %3015 = vmatmul.mubr.msk.bf16.vlgmr.msra.gmra.mxu1 %vm673_vm1, %v1197_v50 }
 0x3c1   : > { %3026 = vmatprep.mubr.msk.bf16.mxu1 %vm3460_vm0, %v3459_v51 }
 0x3d7   : > { %v893_v52 = vpop.xlane.xlu1 %892 }
 0x3d8   : > { %3289 = vrcp.f32 %v893_v52 }
 0x3db   : > { %v1145_v61 = vpop.permute.xlu1 %1144 }
 0x3df   : > { %v1252_v10 = vpop.permute.xlu1 %1251 }
 0x3e0   : > { %v1257_v11 = vsel %vm673_vm1, %v1252_v10, 0 }
 0x3e3   : > { %v1249_v15 = vpop.permute.xlu1 %1248 }
 0x3e5   : > { %v3290_v54 = vpop.eup %3289 }
 0x3e6   : > { %v901_v57 = vmul.f32 %v3290_v54, %v3282_v28 }
 0x3e8   : > { %v905_v58 = vpack.c.bf16 %v901_v57, %v901_v57 }
 0x3ea   : > { %2997 = vmatmul.mubr.msk.bf16.vlgmr.msra.gmra.mxu0 %vm673_vm1, %v905_v58 }
 0x3eb   : > { %3007 = vmatpush3.bf16.xpose.msra.mxu0 %v1153_v9  ;;  %3008 = vmatprep.mubr.msk.bf16.mxu0 %vm3460_vm0, %v3459_v51 }
 0x3ec   : > { %3018 = vmatprep.subr.bf16.mxu0 %v3459_v51 }
 0x3f2   : > { %3009 = vmatmul.mubr.msk.bf16.vlgmr.msra.gmra.mxu0 %vm673_vm1, %v1145_v61 }
 0x3f3   : > { %3019 = vmatpush3.bf16.xpose.msra.mxu0 %v1257_v11  ;;  %3020 = vmatprep.mubr.msk.bf16.mxu0 %vm3460_vm0, %v3459_v51 }
 0x3f4   : > { %3030 = vmatprep.subr.bf16.mxu0 %v3459_v51 }
 0x3fa   : > { %3021 = vmatmul.mubr.msk.bf16.vlgmr.msra.gmra.mxu0 %vm673_vm1, %v1249_v15 }
 0x3fb   : > { %3032 = vmatprep.mubr.msk.bf16.mxu0 %vm3460_vm0, %v3459_v51 }
 0x468   : > { %v3804_v18 = vpop.f32.mrf.mxu1 }
 0x46a   : > { %v2980_v20 = vpop.f32.mrf.mxu1 }
 0x46c   : > { %v950_v23 = vpop.f32.mrf.mxu1 }
 0x46e   : > { %v2981_v24 = vpop.f32.mrf.mxu1 }
 0x470   : > { %v3806_v25 = vpop.f32.mrf.mxu1 }
 0x471   : > { %v3808_v26 = vpop.f32.mrf.mxu0 }
 0x472   : > { %v2992_v27 = vpop.f32.mrf.mxu1 }
 0x473   : > { %v2986_v28 = vpop.f32.mrf.mxu0 }
 0x474   : > { %v1042_v29 = vpop.f32.mrf.mxu1 }
 0x475   : > { %v996_v30 = vpop.f32.mrf.mxu0 }
 0x476   : > { %v2993_v31 = vpop.f32.mrf.mxu1 }
 0x477   : > { %v2987_v32 = vpop.f32.mrf.mxu0 }
 0x478   : > { %v1137_v33 = vpop.f32.mrf.mxu1 }
 0x479   : > { %v1138_v35 = vadd.f32 %v3589_v4, %v1137_v33 }
 0x47a   : > { %v3004_v36 = vpop.f32.mrf.mxu1 }
 0x47b   : > { %v1299_v37 = vsel %vm673_vm1, %v1138_v35, -inf }
 0x47c   : > { %1300 = vmax.xlane.f32.xlu0 %v1299_v37  ;;  %v1140_v38 = vpop.f32.mrf.mxu1 }
 0x47e   : > { %v3005_v39 = vpop.f32.mrf.mxu1 }
 0x480   : > { %v1241_v40 = vpop.f32.mrf.mxu1 }
 0x481   : > { %v1242_v41 = vadd.f32 %v3599_v6, %v1241_v40 }
 0x482   : > { %v3016_v42 = vpop.f32.mrf.mxu1 }
 0x483   : > { %v1305_v43 = vsel %vm673_vm1, %v1242_v41, -inf }
 0x484   : > { %1306 = vmax.xlane.f32.xlu0 %v1305_v43  ;;  %v1244_v44 = vpop.f32.mrf.mxu1 }
 0x486   : > { %v3017_v45 = vpop.f32.mrf.mxu1 }
 0x4aa   : > { %v3814_v46 = vpop.f32.mrf.mxu0 }
 0x4ac   : > { %v2998_v47 = vpop.f32.mrf.mxu0 }
 0x4ae   : > { %v1088_v19 = vpop.f32.mrf.mxu0 }
 0x4b0   : > { %v2999_v48 = vpop.f32.mrf.mxu0 }
 0x4b2   : > { %v1189_v49 = vpop.f32.mrf.mxu0 }
 0x4b3   : > { %v1190_v50 = vadd.f32 %v3594_v5, %v1189_v49 }
 0x4b4   : > { %v3010_v52 = vpop.f32.mrf.mxu0 }
 0x4b5   : > { %v1302_v54 = vsel %vm673_vm1, %v1190_v50, -inf }
 0x4b6   : > { %1303 = vmax.xlane.f32.xlu1 %v1302_v54  ;;  %v1192_v57 = vpop.f32.mrf.mxu0 }
 0x4b8   : > { %v3011_v58 = vpop.f32.mrf.mxu0 }
 0x4ba   : > { %v1293_v61 = vpop.f32.mrf.mxu0 }
 0x4bb   : > { %v1294_v9 = vadd.f32 %v3604_v7, %v1293_v61 }
 0x4bc   : > { %v3022_v10 = vpop.f32.mrf.mxu0 }
 0x4bd   : > { %v1308_v11 = vsel %vm673_vm1, %v1294_v9, -inf }
 0x4be   : > { %1309 = vmax.xlane.f32.xlu0 %v1308_v11  ;;  %v1296_v15 = vpop.f32.mrf.mxu0 }
 0x4c0   : > { %v3023_v20 = vpop.f32.mrf.mxu0 }
 0x4c7   : > { %1397 = vrot.lane.b32.xlu1 %v3722_v22, %s3461_s27 }
 0x4cb   : > { %1446 = vrot.lane.b32.xlu1 %v3760_v34, %s3461_s27 }
 0x4cf   : > { %1495 = vrot.lane.b32.xlu1 %v3770_v17, %s3461_s27 }
 0x505   : > { %v1301_v23 = vpop.xlane.xlu0 %1300 }
 0x506   : > { %v1311_v24 = vsub.f32 %v1138_v35, %v1301_v23 }
 0x508   : > { %v1315_v27 = vmul.f32 1.442695, %v1311_v24 }
 0x50a   : > { %3291 = vpow2.f32 %v1315_v27 }
 0x50d   : > { %v1307_v30 = vpop.xlane.xlu0 %1306 }
 0x50e   : > { %v1313_v31 = vsub.f32 %v1242_v41, %v1307_v30 }
 0x510   : > { %v1319_v32 = vmul.f32 1.442695, %v1313_v31 }
 0x512   : > { %3293 = vpow2.f32 %v1319_v32 }
 0x517   : > { %v3292_v28 = vpop.eup %3291 }
 0x518   : > { %v1323_v29 = vsel %vm673_vm1, %v3292_v28, 0.0 }
 0x519   : > { %1324 = vadd.xlane.f32.xlu0 %v1323_v29 }
 0x51f   : > { %v3294_v39 = vpop.eup %3293 }
 0x520   : > { %v1329_v40 = vsel %vm673_vm1, %v3294_v39, 0.0 }
 0x52f   : > { %1348 = vrot.lane.b32.xlu0 %v3720_v21, %s3461_s27 }
 0x53f   : > { %v1304_v33 = vpop.xlane.xlu1 %1303 }
 0x540   : > { %v1312_v36 = vsub.f32 %v1190_v50, %v1304_v33 }
 0x542   : > { %v1317_v37 = vmul.f32 1.442695, %v1312_v36 }
 0x543   : > { %v1398_v38 = vpop.permute.xlu1 %1397 }
 0x544   : > { %3295 = vpow2.f32 %v1317_v37  ;;  %v1403_v35 = vsel %vm909_vm2, %v1398_v38, 0 }
 0x545   : > { %3031 = vmatpush3.bf16.msra.mxu0 %v1403_v35 }
 0x546   : > { %3042 = vmatprep.subr.bf16.mxu0 %v3459_v51 }
 0x547   : > { %v1310_v41 = vpop.xlane.xlu0 %1309  ;;  %v1447_v57 = vpop.permute.xlu1 %1446 }
 0x548   : > { %v1314_v44 = vsub.f32 %v1294_v9, %v1310_v41  ;;  %v1452_v61 = vsel %vm909_vm2, %v1447_v57, 0 }
 0x54a   : > { %v1321_v45 = vmul.f32 1.442695, %v1314_v44 }
 0x54b   : > { %v1496_v10 = vpop.permute.xlu1 %1495 }
 0x54c   : > { %3297 = vpow2.f32 %v1321_v45  ;;  %v1501_v32 = vsel %vm909_vm2, %v1496_v10, 0 }
 0x54e   : > { %1330 = vadd.xlane.f32.xlu0 %v1329_v40 }
 0x551   : > { %v3296_v42 = vpop.eup %3295 }
 0x552   : > { %v1326_v43 = vsel %vm673_vm1, %v3296_v42, 0.0 }
 0x553   : > { %1327 = vadd.xlane.f32.xlu1 %v1326_v43 }
 0x559   : > { %v3298_v47 = vpop.eup %3297 }
 0x55a   : > { %v1332_v19 = vsel %vm673_vm1, %v3298_v47, 0.0 }
 0x564   : > { %1595 = vrot.lane.b32.xlu1 %v3667_v60, %s3462_s28  ;;  %1545 = vrot.lane.b32.xlu0 %v3658_v55, %s3462_s28 }
 0x568   : > { %1543 = vrot.lane.b32.xlu0 %v3671_v62, %s3462_s28 }
 0x56c   : > { %1645 = vrot.lane.b32.xlu0 %v3673_v63, %s3462_s28 }
 0x570   : > { %1643 = vrot.lane.b32.xlu0 %v3691_v13, %s3462_s28 }
 0x588   : > { %1333 = vadd.xlane.f32.xlu1 %v1332_v19 }
 0x599   : > { %1593 = vrot.lane.b32.xlu1 %v3695_v14, %s3462_s28 }
 0x59d   : > { %1695 = vrot.lane.b32.xlu1 %v3683_v12, %s3462_s28 }
 0x5a1   : > { %1693 = vrot.lane.b32.xlu1 %v3710_v16, %s3462_s28 }
 0x5a2   : > { %v1325_v48 = vpop.xlane.xlu0 %1324 }
 0x5a3   : > { %3299 = vrcp.f32 %v1325_v48 }
 0x5a6   : > { %v1349_v49 = vpop.permute.xlu0 %1348 }
 0x5a7   : > { %v1354_v50 = vsel %vm909_vm2, %v1349_v49, 0 }
 0x5a8   : > { %3025 = vmatpush3.bf16.msra.mxu1 %v1354_v50 }
 0x5a9   : > { %3036 = vmatprep.subr.bf16.mxu1 %v3459_v51 }
 0x5b0   : > { %v3300_v52 = vpop.eup %3299 }
 0x5b1   : > { %v1339_v54 = vmul.f32 %v3300_v52, %v3292_v28 }
 0x5b3   : > { %v1343_v58 = vpack.c.bf16 %v1339_v54, %v1339_v54 }
 0x5b5   : > { %3027 = vmatmul.mubr.msk.bf16.vlgmr.msra.gmra.mxu1 %vm673_vm1, %v1343_v58 }
 0x5b6   : > { %3037 = vmatpush3.bf16.msra.mxu1 %v1452_v61  ;;  %3038 = vmatprep.mubr.msk.bf16.mxu1 %vm3460_vm0, %v3459_v51 }
 0x5b7   : > { %3048 = vmatprep.subr.bf16.mxu1 %v3459_v51 }
 0x5d7   : > { %v1331_v9 = vpop.xlane.xlu0 %1330 }
 0x5d8   : > { %3301 = vrcp.f32 %v1331_v9 }
 0x5db   : > { %v1546_v15 = vpop.permute.xlu0 %1545 }
 0x5dc   : > { %v1328_v11 = vpop.xlane.xlu1 %1327  ;;  %v1551_v29 = vsel %vm673_vm1, %v1546_v15, 0 }
 0x5dd   : > { %3303 = vrcp.f32 %v1328_v11 }
 0x5df   : > { %v1544_v27 = vpop.permute.xlu0 %1543 }
 0x5e0   : > { %v1596_v38 = vpop.permute.xlu1 %1595 }
 0x5e1   : > { %v1601_v41 = vsel %vm673_vm1, %v1596_v38, 0 }
 0x5e3   : > { %v1646_v33 = vpop.permute.xlu0 %1645 }
 0x5e4   : > { %v1651_v36 = vsel %vm673_vm1, %v1646_v33, 0 }
 0x5e5   : > { %v3302_v20 = vpop.eup %3301 }
 0x5e6   : > { %v1341_v23 = vmul.f32 %v3302_v20, %v3294_v39 }
 0x5e7   : > { %v1644_v37 = vpop.permute.xlu0 %1643 }
 0x5e8   : > { %v1345_v24 = vpack.c.bf16 %v1341_v23, %v1341_v23 }
 0x5ea   : > { %v3304_v28 = vpop.eup %3303  ;;  %3039 = vmatmul.mubr.msk.bf16.vlgmr.msra.gmra.mxu1 %vm673_vm1, %v1345_v24 }
 0x5eb   : > { %3049 = vmatpush3.bf16.xpose.msra.mxu1 %v1551_v29  ;;  %v1340_v30 = vmul.f32 %v3304_v28, %v3296_v42  ;;  %3050 = vmatprep.mubr.msk.bf16.mxu1 %vm3460_vm0, %v3459_v51 }
 0x5ec   : > { %3060 = vmatprep.subr.bf16.mxu1 %v3459_v51 }
 0x5ed   : > { %v1344_v31 = vpack.c.bf16 %v1340_v30, %v1340_v30 }
 0x5ef   : > { %3033 = vmatmul.mubr.msk.bf16.vlgmr.msra.gmra.mxu0 %vm673_vm1, %v1344_v31 }
 0x5f0   : > { %3043 = vmatpush3.bf16.msra.mxu0 %v1501_v32  ;;  %3044 = vmatprep.mubr.msk.bf16.mxu0 %vm3460_vm0, %v3459_v51 }
 0x5f1   : > { %3054 = vmatprep.subr.bf16.mxu0 %v3459_v51 }
 0x5f2   : > { %3051 = vmatmul.mubr.msk.bf16.vlgmr.msra.gmra.mxu1 %vm673_vm1, %v1544_v27 }
 0x5f3   : > { %3061 = vmatpush3.bf16.xpose.msra.mxu1 %v1651_v36  ;;  %3062 = vmatprep.mubr.msk.bf16.mxu1 %vm3460_vm0, %v3459_v51 }
 0x5f4   : > { %3072 = vmatprep.subr.bf16.mxu1 %v3459_v51 }
 0x5fa   : > { %3063 = vmatmul.mubr.msk.bf16.vlgmr.msra.gmra.mxu1 %vm673_vm1, %v1644_v37 }
 0x5fb   : > { %3074 = vmatprep.mubr.msk.bf16.mxu1 %vm3460_vm0, %v3459_v51 }
 0x611   : > { %v1334_v35 = vpop.xlane.xlu1 %1333 }
 0x612   : > { %3305 = vrcp.f32 %v1334_v35 }
 0x615   : > { %v1594_v43 = vpop.permute.xlu1 %1593 }
 0x619   : > { %v1696_v44 = vpop.permute.xlu1 %1695 }
 0x61a   : > { %v1701_v45 = vsel %vm673_vm1, %v1696_v44, 0 }
 0x61f   : > { %v3306_v39 = vpop.eup %3305 }
 0x620   : > { %v1342_v40 = vmul.f32 %v3306_v39, %v3298_v47  ;;  %v1694_v47 = vpop.permute.xlu1 %1693 }
 0x622   : > { %v1346_v42 = vpack.c.bf16 %v1342_v40, %v1342_v40 }
 0x624   : > { %3045 = vmatmul.mubr.msk.bf16.vlgmr.msra.gmra.mxu0 %vm673_vm1, %v1346_v42 }
 0x625   : > { %3055 = vmatpush3.bf16.xpose.msra.mxu0 %v1601_v41  ;;  %3056 = vmatprep.mubr.msk.bf16.mxu0 %vm3460_vm0, %v3459_v51 }
 0x626   : > { %3066 = vmatprep.subr.bf16.mxu0 %v3459_v51 }
 0x62c   : > { %3057 = vmatmul.mubr.msk.bf16.vlgmr.msra.gmra.mxu0 %vm673_vm1, %v1594_v43 }
 0x62d   : > { %3067 = vmatpush3.bf16.xpose.msra.mxu0 %v1701_v45  ;;  %3068 = vmatprep.mubr.msk.bf16.mxu0 %vm3460_vm0, %v3459_v51 }
 0x62e   : > { %3078 = vmatprep.subr.bf16.mxu0 %v3459_v51 }
 0x634   : > { %3069 = vmatmul.mubr.msk.bf16.vlgmr.msra.gmra.mxu0 %vm673_vm1, %v1694_v47 }
 0x635   : > { %3080 = vmatprep.mubr.msk.bf16.mxu0 %vm3460_vm0, %v3459_v51 }
 0x675   : > { %v3888_v19 = vpop.f32.mrf.mxu1 }
 0x677   : > { %v3028_v48 = vpop.f32.mrf.mxu1 }
 0x679   : > { %v1393_v49 = vpop.f32.mrf.mxu1 }
 0x67b   : > { %v3029_v50 = vpop.f32.mrf.mxu1 }
 0x6aa   : > { %v3890_v52 = vpop.f32.mrf.mxu1 }
 0x6ac   : > { %v3040_v54 = vpop.f32.mrf.mxu1 }
 0x6ae   : > { %v1491_v57 = vpop.f32.mrf.mxu1 }
 0x6af   : > { %v3892_v58 = vpop.f32.mrf.mxu0 }
 0x6b0   : > { %v3041_v61 = vpop.f32.mrf.mxu1 }
 0x6b1   : > { %v3034_v9 = vpop.f32.mrf.mxu0 }
 0x6b2   : > { %v1587_v10 = vpop.f32.mrf.mxu1 }
 0x6b3   : > { %v1442_v11 = vpop.f32.mrf.mxu0  ;;  %v1588_v15 = vadd.f32 %v3589_v4, %v1587_v10 }
 0x6b4   : > { %v3052_v20 = vpop.f32.mrf.mxu1 }
 0x6b5   : > { %v3035_v23 = vpop.f32.mrf.mxu0  ;;  %v1743_v24 = vsel %vm673_vm1, %v1588_v15, -inf }
 0x6b6   : > { %1744 = vmax.xlane.f32.xlu0 %v1743_v24  ;;  %v1590_v27 = vpop.f32.mrf.mxu1 }
 0x6b8   : > { %v3053_v28 = vpop.f32.mrf.mxu1 }
 0x6ba   : > { %v1687_v29 = vpop.f32.mrf.mxu1 }
 0x6bb   : > { %v1688_v30 = vadd.f32 %v3599_v6, %v1687_v29 }
 0x6bc   : > { %v3064_v31 = vpop.f32.mrf.mxu1 }
 0x6bd   : > { %v1749_v32 = vsel %vm673_vm1, %v1688_v30, -inf }
 0x6be   : > { %1750 = vmax.xlane.f32.xlu0 %v1749_v32  ;;  %v1690_v33 = vpop.f32.mrf.mxu1 }
 0x6c0   : > { %v3065_v36 = vpop.f32.mrf.mxu1 }
 0x6e4   : > { %v3898_v37 = vpop.f32.mrf.mxu0 }
 0x6e6   : > { %v3046_v38 = vpop.f32.mrf.mxu0 }
 0x6e8   : > { %v1540_v35 = vpop.f32.mrf.mxu0 }
 0x6ea   : > { %v3047_v39 = vpop.f32.mrf.mxu0 }
 0x6ec   : > { %v1637_v40 = vpop.f32.mrf.mxu0 }
 0x6ed   : > { %v1638_v42 = vadd.f32 %v3594_v5, %v1637_v40 }
 0x6ee   : > { %v3058_v43 = vpop.f32.mrf.mxu0 }
 0x6ef   : > { %v1746_v41 = vsel %vm673_vm1, %v1638_v42, -inf }
 0x6f0   : > { %1747 = vmax.xlane.f32.xlu1 %v1746_v41  ;;  %v1640_v44 = vpop.f32.mrf.mxu0 }
 0x6f2   : > { %v3059_v45 = vpop.f32.mrf.mxu0 }
 0x6f4   : > { %v1737_v47 = vpop.f32.mrf.mxu0 }
 0x6f5   : > { %v1738_v48 = vadd.f32 %v3604_v7, %v1737_v47 }
 0x6f6   : > { %v3070_v49 = vpop.f32.mrf.mxu0 }
 0x6f7   : > { %v1752_v50 = vsel %vm673_vm1, %v1738_v48, -inf }
 0x6f8   : > { %1753 = vmax.xlane.f32.xlu0 %v1752_v50  ;;  %v1740_v54 = vpop.f32.mrf.mxu0 }
 0x6fa   : > { %v3071_v57 = vpop.f32.mrf.mxu0 }
 0x701   : > { %1839 = vrot.lane.b32.xlu1 %v3722_v22, %s3462_s28 }
 0x705   : > { %1887 = vrot.lane.b32.xlu1 %v3760_v34, %s3462_s28 }
 0x709   : > { %1935 = vrot.lane.b32.xlu1 %v3770_v17, %s3462_s28 }
 0x73f   : > { %v1745_v61 = vpop.xlane.xlu0 %1744 }
 0x740   : > { %v1755_v9 = vsub.f32 %v1588_v15, %v1745_v61 }
 0x742   : > { %v1759_v10 = vmul.f32 1.442695, %v1755_v9 }
 0x744   : > { %3307 = vpow2.f32 %v1759_v10 }
 0x747   : > { %v1751_v23 = vpop.xlane.xlu0 %1750 }
 0x748   : > { %v1757_v24 = vsub.f32 %v1688_v30, %v1751_v23 }
 0x74a   : > { %v1763_v27 = vmul.f32 1.442695, %v1757_v24 }
 0x74c   : > { %3309 = vpow2.f32 %v1763_v27 }
 0x751   : > { %v3308_v11 = vpop.eup %3307 }
 0x752   : > { %v1767_v20 = vsel %vm673_vm1, %v3308_v11, 0.0 }
 0x753   : > { %1768 = vadd.xlane.f32.xlu0 %v1767_v20 }
 0x759   : > { %v3310_v33 = vpop.eup %3309 }
 0x75a   : > { %v1773_v36 = vsel %vm673_vm1, %v3310_v33, 0.0 }
 0x769   : > { %1791 = vrot.lane.b32.xlu0 %v3720_v21, %s3462_s28 }
 0x779   : > { %v1748_v28 = vpop.xlane.xlu1 %1747 }
 0x77a   : > { %v1756_v29 = vsub.f32 %v1638_v42, %v1748_v28 }
 0x77c   : > { %v1761_v31 = vmul.f32 1.442695, %v1756_v29 }
 0x77d   : > { %v1840_v32 = vpop.permute.xlu1 %1839 }
 0x77e   : > { %3311 = vpow2.f32 %v1761_v31  ;;  %v1845_v15 = vsel %vm909_vm2, %v1840_v32, 0 }
 0x77f   : > { %3079 = vmatpush3.bf16.msra.mxu0 %v1845_v15 }
 0x780   : > { %3090 = vmatprep.subr.bf16.mxu0 %v3459_v51 }
 0x781   : > { %v1754_v30 = vpop.xlane.xlu0 %1753  ;;  %v1888_v41 = vpop.permute.xlu1 %1887 }
 0x782   : > { %v1758_v39 = vsub.f32 %v1738_v48, %v1754_v30 }
 0x784   : > { %v1765_v40 = vmul.f32 1.442695, %v1758_v39 }
 0x786   : > { %3313 = vpow2.f32 %v1765_v40 }
 0x788   : > { %1774 = vadd.xlane.f32.xlu0 %v1773_v36 }
 0x78b   : > { %v3312_v38 = vpop.eup %3311 }
 0x78c   : > { %v1770_v35 = vsel %vm673_vm1, %v3312_v38, 0.0 }
 0x78d   : > { %1771 = vadd.xlane.f32.xlu1 %v1770_v35 }
 0x793   : > { %v3314_v42 = vpop.eup %3313 }
 0x794   : > { %v1776_v43 = vsel %vm673_vm1, %v3314_v42, 0.0 }
 0x79e   : > { %2035 = vrot.lane.b32.xlu1 %v3667_v60, %s3463_s24  ;;  %1985 = vrot.lane.b32.xlu0 %v3658_v55, %s3463_s24 }
 0x7a2   : > { %1983 = vrot.lane.b32.xlu0 %v3671_v62, %s3463_s24 }
 0x7a6   : > { %2085 = vrot.lane.b32.xlu0 %v3673_v63, %s3463_s24 }
 0x7aa   : > { %2083 = vrot.lane.b32.xlu0 %v3691_v13, %s3463_s24 }
 0x7c2   : > { %1777 = vadd.xlane.f32.xlu1 %v1776_v43 }
 0x7d3   : > { %2033 = vrot.lane.b32.xlu1 %v3695_v14, %s3463_s24  ;;  %v1893_v14 = vsel %vm909_vm2, %v1888_v41, 0 }
 0x7d7   : > { %2135 = vrot.lane.b32.xlu1 %v3683_v12, %s3463_s24 }
 0x7db   : > { %2133 = vrot.lane.b32.xlu1 %v3710_v16, %s3463_s24  ;;  %v1936_v16 = vpop.permute.xlu1 %1935 }
 0x7dc   : > { %v1769_v55 = vpop.xlane.xlu0 %1768 }
 0x7dd   : > { %3315 = vrcp.f32 %v1769_v55 }
 0x7e0   : > { %v1792_v60 = vpop.permute.xlu0 %1791 }
 0x7e1   : > { %v1797_v62 = vsel %vm909_vm2, %v1792_v60, 0 }
 0x7e2   : > { %3073 = vmatpush3.bf16.msra.mxu1 %v1797_v62 }
 0x7e3   : > { %3084 = vmatprep.subr.bf16.mxu1 %v3459_v51 }
 0x7ea   : > { %v3316_v63 = vpop.eup %3315 }
 0x7eb   : > { %v1783_v13 = vmul.f32 %v3316_v63, %v3308_v11  ;;  %v1941_v11 = vsel %vm909_vm2, %v1936_v16, 0 }
 0x7ed   : > { %v1787_v44 = vpack.c.bf16 %v1783_v13, %v1783_v13 }
 0x7ef   : > { %3075 = vmatmul.mubr.msk.bf16.vlgmr.msra.gmra.mxu1 %vm673_vm1, %v1787_v44 }
 0x7f0   : > { %3085 = vmatpush3.bf16.msra.mxu1 %v1893_v14  ;;  %3086 = vmatprep.mubr.msk.bf16.mxu1 %vm3460_vm0, %v3459_v51 }
 0x7f1   : > { %3096 = vmatprep.subr.bf16.mxu1 %v3459_v51 }
 0x811   : > { %v1775_v12 = vpop.xlane.xlu0 %1774 }
 0x812   : > { %3317 = vrcp.f32 %v1775_v12 }
 0x815   : > { %v1986_v47 = vpop.permute.xlu0 %1985 }
 0x816   : > { %v1772_v45 = vpop.xlane.xlu1 %1771  ;;  %v1991_v61 = vsel %vm673_vm1, %v1986_v47, 0 }
 0x817   : > { %3319 = vrcp.f32 %v1772_v45 }
 0x819   : > { %v1984_v54 = vpop.permute.xlu0 %1983 }
 0x81a   : > { %v2036_v27 = vpop.permute.xlu1 %2035 }
 0x81d   : > { %v2086_v20 = vpop.permute.xlu0 %2085 }
 0x81e   : > { %v2091_v23 = vsel %vm673_vm1, %v2086_v20, 0 }
 0x81f   : > { %v3318_v48 = vpop.eup %3317 }
 0x820   : > { %v1785_v49 = vmul.f32 %v3318_v48, %v3310_v33  ;;  %v2041_v33 = vsel %vm673_vm1, %v2036_v27, 0 }
 0x821   : > { %v2084_v24 = vpop.permute.xlu0 %2083 }
 0x822   : > { %v1789_v50 = vpack.c.bf16 %v1785_v49, %v1785_v49 }
 0x824   : > { %v3320_v57 = vpop.eup %3319  ;;  %3087 = vmatmul.mubr.msk.bf16.vlgmr.msra.gmra.mxu1 %vm673_vm1, %v1789_v50 }
 0x825   : > { %3097 = vmatpush3.bf16.xpose.msra.mxu1 %v1991_v61  ;;  %v1784_v9 = vmul.f32 %v3320_v57, %v3312_v38  ;;  %3098 = vmatprep.mubr.msk.bf16.mxu1 %vm3460_vm0, %v3459_v51 }
 0x826   : > { %3108 = vmatprep.subr.bf16.mxu1 %v3459_v51 }
 0x827   : > { %v1788_v10 = vpack.c.bf16 %v1784_v9, %v1784_v9 }
 0x829   : > { %3081 = vmatmul.mubr.msk.bf16.vlgmr.msra.gmra.mxu0 %vm673_vm1, %v1788_v10 }
 0x82a   : > { %3091 = vmatpush3.bf16.msra.mxu0 %v1941_v11  ;;  %3092 = vmatprep.mubr.msk.bf16.mxu0 %vm3460_vm0, %v3459_v51 }
 0x82b   : > { %3102 = vmatprep.subr.bf16.mxu0 %v3459_v51 }
 0x82c   : > { %3099 = vmatmul.mubr.msk.bf16.vlgmr.msra.gmra.mxu1 %vm673_vm1, %v1984_v54 }
 0x82d   : > { %3109 = vmatpush3.bf16.xpose.msra.mxu1 %v2091_v23  ;;  %3110 = vmatprep.mubr.msk.bf16.mxu1 %vm3460_vm0, %v3459_v51 }
 0x82e   : > { %3120 = vmatprep.subr.bf16.mxu1 %v3459_v51 }
 0x834   : > { %3111 = vmatmul.mubr.msk.bf16.vlgmr.msra.gmra.mxu1 %vm673_vm1, %v2084_v24 }
 0x835   : > { %3122 = vmatprep.mubr.msk.bf16.mxu1 %vm3460_vm0, %v3459_v51 }
 0x84b   : > { %v1778_v28 = vpop.xlane.xlu1 %1777 }
 0x84c   : > { %3321 = vrcp.f32 %v1778_v28 }
 0x84f   : > { %v2034_v15 = vpop.permute.xlu1 %2033 }
 0x853   : > { %v2136_v36 = vpop.permute.xlu1 %2135 }
 0x854   : > { %v2141_v38 = vsel %vm673_vm1, %v2136_v36, 0 }
 0x857   : > { %v2134_v35 = vpop.permute.xlu1 %2133 }
 0x859   : > { %v3322_v29 = vpop.eup %3321 }
 0x85a   : > { %v1786_v31 = vmul.f32 %v3322_v29, %v3314_v42 }
 0x85c   : > { %v1790_v32 = vpack.c.bf16 %v1786_v31, %v1786_v31 }
 0x85e   : > { %3093 = vmatmul.mubr.msk.bf16.vlgmr.msra.gmra.mxu0 %vm673_vm1, %v1790_v32 }
 0x85f   : > { %3103 = vmatpush3.bf16.xpose.msra.mxu0 %v2041_v33  ;;  %3104 = vmatprep.mubr.msk.bf16.mxu0 %vm3460_vm0, %v3459_v51 }
 0x860   : > { %3114 = vmatprep.subr.bf16.mxu0 %v3459_v51 }
 0x866   : > { %3105 = vmatmul.mubr.msk.bf16.vlgmr.msra.gmra.mxu0 %vm673_vm1, %v2034_v15 }
 0x867   : > { %3115 = vmatpush3.bf16.xpose.msra.mxu0 %v2141_v38  ;;  %3116 = vmatprep.mubr.msk.bf16.mxu0 %vm3460_vm0, %v3459_v51 }
 0x868   : > { %3126 = vmatprep.subr.bf16.mxu0 %v3459_v51 }
 0x86e   : > { %3117 = vmatmul.mubr.msk.bf16.vlgmr.msra.gmra.mxu0 %vm673_vm1, %v2134_v35 }
 0x86f   : > { %3128 = vmatprep.mubr.msk.bf16.mxu0 %vm3460_vm0, %v3459_v51 }
 0x8af   : > { %v3972_v30 = vpop.f32.mrf.mxu1 }
 0x8b1   : > { %v3076_v39 = vpop.f32.mrf.mxu1 }
 0x8b3   : > { %v1836_v40 = vpop.f32.mrf.mxu1 }
 0x8b5   : > { %v3077_v42 = vpop.f32.mrf.mxu1 }
 0x8e4   : > { %v3974_v43 = vpop.f32.mrf.mxu1 }
 0x8e6   : > { %v3088_v55 = vpop.f32.mrf.mxu1 }
 0x8e8   : > { %v1932_v60 = vpop.f32.mrf.mxu1 }
 0x8e9   : > { %v1881_v62 = vpop.f32.mrf.mxu0 }
 0x8ea   : > { %v3089_v63 = vpop.f32.mrf.mxu1 }
 0x8eb   : > { %v3082_v13 = vpop.f32.mrf.mxu0 }
 0x8ec   : > { %v2027_v41 = vpop.f32.mrf.mxu1 }
 0x8ed   : > { %v1884_v44 = vpop.f32.mrf.mxu0  ;;  %v2028_v14 = vadd.f32 %v3589_v4, %v2027_v41 }
 0x8ee   : > { %v3100_v12 = vpop.f32.mrf.mxu1 }
 0x8ef   : > { %v3083_v16 = vpop.f32.mrf.mxu0  ;;  %v2183_v45 = vsel %vm673_vm1, %v2028_v14, -inf }
 0x8f0   : > { %2184 = vmax.xlane.f32.xlu0 %v2183_v45  ;;  %v2030_v47 = vpop.f32.mrf.mxu1 }
 0x8f2   : > { %v3101_v48 = vpop.f32.mrf.mxu1 }
 0x8f4   : > { %v2127_v49 = vpop.f32.mrf.mxu1 }
 0x8f5   : > { %v2128_v50 = vadd.f32 %v3599_v6, %v2127_v49 }
 0x8f6   : > { %v3112_v54 = vpop.f32.mrf.mxu1 }
 0x8f7   : > { %v2189_v57 = vsel %vm673_vm1, %v2128_v50, -inf }
 0x8f8   : > { %2190 = vmax.xlane.f32.xlu0 %v2189_v57  ;;  %v2130_v61 = vpop.f32.mrf.mxu1 }
 0x8fa   : > { %v3113_v9 = vpop.f32.mrf.mxu1 }
 0x91e   : > { %v1977_v10 = vpop.f32.mrf.mxu0 }
 0x920   : > { %v3094_v11 = vpop.f32.mrf.mxu0 }
 0x922   : > { %v1980_v20 = vpop.f32.mrf.mxu0 }
 0x924   : > { %v3095_v4 = vpop.f32.mrf.mxu0 }
 0x926   : > { %v2077_v23 = vpop.f32.mrf.mxu0 }
 0x927   : > { %v2078_v24 = vadd.f32 %v3594_v5, %v2077_v23 }
 0x928   : > { %v3106_v27 = vpop.f32.mrf.mxu0 }
 0x929   : > { %v2186_v28 = vsel %vm673_vm1, %v2078_v24, -inf }
 0x92a   : > { %2187 = vmax.xlane.f32.xlu1 %v2186_v28  ;;  %v2080_v29 = vpop.f32.mrf.mxu0 }
 0x92c   : > { %v3107_v31 = vpop.f32.mrf.mxu0 }
 0x92e   : > { %v2177_v6 = vpop.f32.mrf.mxu0 }
 0x92f   : > { %v2178_v32 = vadd.f32 %v3604_v7, %v2177_v6 }
 0x930   : > { %v3118_v15 = vpop.f32.mrf.mxu0 }
 0x931   : > { %v2192_v33 = vsel %vm673_vm1, %v2178_v32, -inf  ;;  %v3268_v15 = vld [vmem:[%s384_s8 + $0x30] sm:$0xff]  }
 0x932   : > { %2193 = vmax.xlane.f32.xlu0 %v2192_v33  ;;  %v2180_v36 = vpop.f32.mrf.mxu0 }
 0x934   : > { %v3119_v38 = vpop.f32.mrf.mxu0 }
 0x979   : > { %v2185_v35 = vpop.xlane.xlu0 %2184 }
 0x97a   : > { %v2195_v39 = vsub.f32 %v2028_v14, %v2185_v35  ;;  %v3269_v35 = vld [vmem:[%s384_s8 + $0x28] sm:$0xff]  }
 0x97c   : > { %v2199_v40 = vmul.f32 1.442695, %v2195_v39 }
 0x97e   : > { %3323 = vpow2.f32 %v2199_v40 }
 0x981   : > { %v2191_v5 = vpop.xlane.xlu0 %2190 }
 0x982   : > { %v2197_v42 = vsub.f32 %v2128_v50, %v2191_v5  ;;  %v3270_v5 = vld [vmem:[%s384_s8 + $0x20] sm:$0xff]  }
 0x984   : > { %v2203_v55 = vmul.f32 1.442695, %v2197_v42  ;;  %v3271_v42 = vld [vmem:[%s384_s8 + $0x18] sm:$0xff]  }
 0x986   : > { %3325 = vpow2.f32 %v2203_v55  ;;  %v3272_v55 = vld [vmem:[%s384_s8 + $0x10] sm:$0xff]  }
 0x98b   : > { %v3324_v60 = vpop.eup %3323 }
 0x98c   : > { %v2207_v63 = vsel %vm673_vm1, %v3324_v60, 0.0 }
 0x98d   : > { %2208 = vadd.xlane.f32.xlu0 %v2207_v63  ;;  %v3274_v63 = vld [vmem:[%s384_s8] sm:$0xff]  }
 0x993   : > { %v3326_v13 = vpop.eup %3325 }
 0x994   : > { %v2213_v7 = vsel %vm673_vm1, %v3326_v13, 0.0 }
 0x995   : > { %2214 = vadd.xlane.f32.xlu0 %v2213_v7 }
 0x9ab   : > { %2231 = vrot.lane.b32.xlu0 %v3720_v21, %s3463_s24 }
 0x9af   : > { %2492 = vperm.xlu0 %3233, %v3569_v0  }
 0x9b3   : > { %v2188_v41 = vpop.xlane.xlu1 %2187  ;;  %2429 = vrot.lane.b32.xlu0 %v3892_v58, %s3464_s29 }
 0x9b4   : > { %v2196_v44 = vsub.f32 %v2078_v24, %v2188_v41 }
 0x9b6   : > { %v2201_v14 = vmul.f32 1.442695, %v2196_v44 }
 0x9b7   : > { %2507 = vperm.xlu0 %3233, %v3584_v3  }
 0x9b8   : > { %3327 = vpow2.f32 %v2201_v14 }
 0x9bb   : > { %2433 = vrot.lane.b32.xlu0 %v3898_v37, %s3464_s29  ;;  %v2194_v3 = vpop.xlane.xlu0 %2193 }
 0x9bc   : > { %v2198_v58 = vsub.f32 %v2178_v32, %v2194_v3  ;;  %v3267_v32 = vld [vmem:[%s384_s8 + $0x38] sm:$0xff]  }
 0x9be   : > { %v2205_v12 = vmul.f32 1.442695, %v2198_v58 }
 0x9bf   : > { %2445 = vrot.lane.b32.xlu0 %v1881_v62, %s3465_s30 }
 0x9c0   : > { %3329 = vpow2.f32 %v2205_v12 }
 0x9c3   : > { %2449 = vrot.lane.b32.xlu0 %v1977_v10, %s3465_s30 }
 0x9c5   : > { %v3328_v21 = vpop.eup %3327 }
 0x9c6   : > { %v2210_v0 = vsel %vm673_vm1, %v3328_v21, 0.0 }
 0x9c7   : > { %2211 = vadd.xlane.f32.xlu1 %v2210_v0 }
 0x9cd   : > { %v3330_v37 = vpop.eup %3329 }
 0x9ce   : > { %v2216_v16 = vsel %vm673_vm1, %v3330_v37, 0.0 }
 0x9d8   : > { %2279 = vrot.lane.b32.xlu1 %v3722_v22, %s3463_s24 }
 0x9dc   : > { %2327 = vrot.lane.b32.xlu1 %v3760_v34, %s3463_s24 }
 0xa00   : > { %2217 = vadd.xlane.f32.xlu1 %v2216_v16 }
 0xa11   : > { %2375 = vrot.lane.b32.xlu1 %v3770_v17, %s3463_s24 }
 0xa15   : > { %2497 = vperm.xlu1 %3234, %v3574_v1  }
 0xa16   : > { %v2209_v62 = vpop.xlane.xlu0 %2208 }
 0xa17   : > { %3331 = vrcp.f32 %v2209_v62 }
 0xa19   : > { %2427 = vrot.lane.b32.xlu1 %v3888_v19, %s3464_s29 }
 0xa1d   : > { %2502 = vperm.xlu1 %3234, %v3579_v2  }
 0xa1e   : > { %v2215_v22 = vpop.xlane.xlu0 %2214 }
 0xa1f   : > { %3333 = vrcp.f32 %v2215_v22 }
 0xa21   : > { %2431 = vrot.lane.b32.xlu1 %v3890_v52, %s3464_s29 }
 0xa22   : > { %v2232_v34 = vpop.permute.xlu0 %2231 }
 0xa23   : > { %v2237_v45 = vsel %vm909_vm2, %v2232_v34, 0 }
 0xa24   : > { %v3332_v47 = vpop.eup %3331  ;;  %3121 = vmatpush3.bf16.msra.mxu1 %v2237_v45 }
 0xa25   : > { %2443 = vrot.lane.b32.xlu1 %v3972_v30, %s3465_s30  ;;  %v2223_v1 = vmul.f32 %v3332_v47, %v3324_v60  ;;  %3132 = vmatprep.subr.bf16.mxu1 %v3459_v51  ;;  %v3273_v60 = vld [vmem:[%s384_s8 + $0x8] sm:$0xff]  }
 0xa27   : > { %v2227_v17 = vpack.c.bf16 %v2223_v1, %v2223_v1 }
 0xa29   : > { %2447 = vrot.lane.b32.xlu1 %v3974_v43, %s3465_s30  ;;  %3123 = vmatmul.mubr.msk.bf16.vlgmr.msra.gmra.mxu1 %vm673_vm1, %v2227_v17 }
 0xa2a   : > { %3134 = vmatprep.mubr.msk.bf16.mxu1 %vm3460_vm0, %v3459_v51  ;;  %v2493_v0 = vpop.permute.xlu0 %2492 }
 0xa2c   : > { %v3334_v19 = vpop.eup %3333 }
 0xa2d   : > { %v2225_v30 = vmul.f32 %v3334_v19, %v3326_v13 }
 0xa2e   : > { %v2430_v58 = vpop.permute.xlu0 %2429 }
 0xa2f   : > { %v2229_v43 = vpack.c.bf16 %v2225_v30, %v2225_v30 }
 0xa50   : > { %v2212_v2 = vpop.xlane.xlu1 %2211 }
 0xa51   : > { %3335 = vrcp.f32 %v2212_v2 }
 0xa54   : > { %v2280_v52 = vpop.permute.xlu1 %2279 }
 0xa55   : > { %v2285_v48 = vsel %vm909_vm2, %v2280_v52, 0  ;;  %v2472_v52 = vsel %vm673_vm1, %v3808_v26, %v2430_v58 }
 0xa56   : > { %3127 = vmatpush3.bf16.msra.mxu0 %v2285_v48 }
 0xa57   : > { %3138 = vmatprep.subr.bf16.mxu0 %v3459_v51 }
 0xa58   : > { %v2328_v49 = vpop.permute.xlu1 %2327 }
 0xa59   : > { %v2333_v50 = vsel %vm909_vm2, %v2328_v49, 0 }
 0xa5a   : > { %3133 = vmatpush3.bf16.msra.mxu1 %v2333_v50 }
 0xa5b   : > { %3144 = vmatprep.subr.bf16.mxu1 %v3267_v32 }
 0xa5d   : > { %3135 = vmatmul.mubr.msk.bf16.vlgmr.msra.gmra.mxu1 %vm673_vm1, %v2229_v43 }
 0xa5e   : > { %v3336_v54 = vpop.eup %3335  ;;  %3145 = vmatpush3.bf16.msra.mxu1 %v3267_v32 }
 0xa5f   : > { %v2224_v57 = vmul.f32 %v3336_v54, %v3328_v21  ;;  %3146 = vmatprep.subr.bf16.mxu1 %v3268_v15 }
 0xa61   : > { %v2228_v61 = vpack.c.bf16 %v2224_v57, %v2224_v57 }
 0xa62   : > { %3147 = vmatpush3.bf16.msra.mxu1 %v3268_v15 }
 0xa63   : > { %3129 = vmatmul.mubr.msk.bf16.vlgmr.msra.gmra.mxu0 %vm673_vm1, %v2228_v61  ;;  %3148 = vmatprep.subr.bf16.mxu1 %v3269_v35 }
 0xa64   : > { %3140 = vmatprep.mubr.msk.bf16.mxu0 %vm3460_vm0, %v3459_v51 }
 0xa66   : > { %3149 = vmatpush3.bf16.msra.mxu1 %v3269_v35 }
 0xa67   : > { %3150 = vmatprep.subr.bf16.mxu1 %v3270_v5 }
 0xa6a   : > { %3151 = vmatpush3.bf16.msra.mxu1 %v3270_v5 }
 0xa6b   : > { %3152 = vmatprep.subr.bf16.mxu1 %v3271_v42 }
 0xa6e   : > { %3153 = vmatpush3.bf16.msra.mxu1 %v3271_v42 }
 0xa6f   : > { %3154 = vmatprep.subr.bf16.mxu1 %v3272_v55 }
 0xa72   : > { %3155 = vmatpush3.bf16.msra.mxu1 %v3272_v55 }
 0xa73   : > { %3156 = vmatprep.subr.bf16.mxu1 %v3273_v60 }
 0xa76   : > { %3157 = vmatpush3.bf16.msra.mxu1 %v3273_v60 }
 0xa77   : > { %3158 = vmatprep.subr.bf16.mxu1 %v3274_v63 }
 0xa7a   : > { %3159 = vmatpush3.bf16.msra.mxu1 %v3274_v63 }
 0xa89   : > { %v2218_v9 = vpop.xlane.xlu1 %2217 }
 0xa8a   : > { %3337 = vrcp.f32 %v2218_v9 }
 0xa8d   : > { %v2376_v10 = vpop.permute.xlu1 %2375 }
 0xa8e   : > { %v2381_v11 = vsel %vm909_vm2, %v2376_v10, 0 }
 0xa8f   : > { %3139 = vmatpush3.bf16.msra.mxu0 %v2381_v11 }
 0xa91   : > { %v4033_v14 = vpop.permute.xlu1 %2497 }
 0xa95   : > { %v2428_v21 = vpop.permute.xlu1 %2427 }
 0xa96   : > { %v2471_v47 = vsel %vm673_vm1, %v3804_v18, %v2428_v21 }
 0xa97   : > { %v3338_v20 = vpop.eup %3337 }
 0xa98   : > { %v2226_v4 = vmul.f32 %v3338_v20, %v3330_v37  ;;  %v2508_v37 = vpop.permute.xlu0 %2507 }
 0xa99   : > { %v2503_v3 = vpop.permute.xlu1 %2502 }
 0xa9a   : > { %v2230_v23 = vpack.c.bf16 %v2226_v4, %v2226_v4 }
 0xa9c   : > { %3141 = vmatmul.mubr.msk.bf16.vlgmr.msra.gmra.mxu0 %vm673_vm1, %v2230_v23  ;;  %v2434_v62 = vpop.permute.xlu0 %2433 }
 0xa9d   : > { %v2432_v12 = vpop.permute.xlu1 %2431  ;;  %v2474_v4 = vsel %vm673_vm1, %v3814_v46, %v2434_v62 }
 0xa9e   : > { %v2473_v26 = vsel %vm673_vm1, %v3806_v25, %v2432_v12 }
 0xaa0   : > { %v2446_v34 = vpop.permute.xlu0 %2445 }
 0xaa1   : > { %v2444_v16 = vpop.permute.xlu1 %2443  ;;  %v2477_v48 = vsel %vm2475_vm4, %v2472_v52, %v2446_v34 }
 0xaa2   : > { %v2476_v1 = vsel %vm2475_vm4, %v2471_v47, %v2444_v16 }
 0xaa4   : > { %v2450_v2 = vpop.permute.xlu0 %2449 }
 0xaa5   : > { %v2448_v22 = vpop.permute.xlu1 %2447  ;;  %v2479_v23 = vsel %vm2475_vm4, %v2474_v4, %v2450_v2 }
 0xaa6   : > { %v2478_v10 = vsel %vm2475_vm4, %v2473_v26, %v2448_v22 }
 0xae9   : > { %v2273_v24 = vpop.f32.mrf.mxu1 }
 0xaea   : > { %2459 = vrot.lane.b32.xlu1 %v2273_v24, %s3466_s6 }
 0xaeb   : > { %v3124_v27 = vpop.f32.mrf.mxu1 }
 0xaed   : > { %v2276_v28 = vpop.f32.mrf.mxu1 }
 0xaef   : > { %v3125_v29 = vpop.f32.mrf.mxu1 }
 0xb1d   : > { %v2369_v51 = vpop.f32.mrf.mxu1 }
 0xb1e   : > { %2463 = vrot.lane.b32.xlu1 %v2369_v51, %s3466_s6 }
 0xb1f   : > { %v3136_v31 = vpop.f32.mrf.mxu1 }
 0xb21   : > { %v2372_v6 = vpop.f32.mrf.mxu1 }
 0xb23   : > { %v2321_v33 = vpop.f32.mrf.mxu0  ;;  %v3137_v36 = vpop.f32.mrf.mxu1 }
 0xb24   : > { %2461 = vrot.lane.b32.xlu0 %v2321_v33, %s3466_s6 }
 0xb25   : > { %v3130_v38 = vpop.f32.mrf.mxu0 }
 0xb27   : > { %v2324_v39 = vpop.f32.mrf.mxu0 }
 0xb29   : > { %v3131_v40 = vpop.f32.mrf.mxu0 }
 0xb5c   : > { %v2417_v13 = vpop.f32.mrf.mxu0  ;;  %v2460_v45 = vpop.permute.xlu1 %2459 }
 0xb5d   : > { %2465 = vrot.lane.b32.xlu0 %v2417_v13, %s3466_s6  ;;  %v2481_v17 = vsel %vm2480_vm3, %v2476_v1, %v2460_v45 }
 0xb5e   : > { %v3142_v7 = vpop.f32.mrf.mxu0  ;;  %v2486_v19 = vsel %vm2485_vm5, %v2481_v17, 0.0 }
 0xb5f   : > { %v2510_v49 = vmul.f32 %v2493_v0, %v2486_v19 }
 0xb60   : > { %v2420_v41 = vpop.f32.mrf.mxu0 }
 0xb61   : > { %v2514_v54 = vadd.f32 %v2510_v49, %v3656_v53 }
 0xb62   : > { %v3143_v44 = vpop.f32.mrf.mxu0 }
 0xb90   : > { %v2464_v9 = vpop.permute.xlu1 %2463 }
 0xb91   : > { %v2483_v11 = vsel %vm2480_vm3, %v2478_v10, %v2464_v9 }
 0xb92   : > { %v2488_v20 = vsel %vm2485_vm5, %v2483_v11, 0.0 }
 0xb93   : > { %v2512_v24 = vmul.f32 %v2503_v3, %v2488_v20 }
 0xb95   : > { %v2516_v25 = vadd.f32 %v2512_v24, %v3665_v59 }
 0xb96   : > { %v2462_v30 = vpop.permute.xlu0 %2461 }
 0xb97   : > { %v2482_v50 = vsel %vm2480_vm3, %v2477_v48, %v2462_v30 }
 0xb98   : > { %v2487_v43 = vsel %vm2485_vm5, %v2482_v50, 0.0 }
 0xb99   : > { %v2511_v18 = vmul.f32 %v4033_v14, %v2487_v43 }
 0xb9b   : > { %v2515_v57 = vadd.f32 %v2511_v18, %v3660_v56 }
 0xb9d   : > { %v2518_v61 = vpack.c.bf16 %v2515_v57, %v2514_v54 }
 0xb9f   : > { %3160 = vmatprep.mubr.bf16.mxu1 %v2518_v61 }
 0xbcf   : > { %v2466_v53 = vpop.permute.xlu0 %2465 }
 0xbd0   : > { %v2484_v56 = vsel %vm2480_vm3, %v2479_v23, %v2466_v53 }
 0xbd1   : > { %v2489_v27 = vsel %vm2485_vm5, %v2484_v56, 0.0 }
 0xbd2   : > { %v2513_v28 = vmul.f32 %v2508_v37, %v2489_v27 }
 0xbd4   : > { %v2517_v29 = vadd.f32 %v2513_v28, %v3675_v8 }
 0xbd6   : > { %v2519_v51 = vpack.c.bf16 %v2517_v29, %v2516_v25 }
 0xbd8   : > { %3161 = vmatmul.mubr.bf16.vlgmr.msra.gmra.mxu1 %v2519_v51 }
 0xc98   : > { %v3162_v31 = vpop.f32.mrf.mxu1 }
 0xc99   : > { %v2619_v6 = vmax.f32 %v3162_v31, 0.0 }
 0xc9a   : > { %v2602_v32 = vpop.f32.mrf.mxu1 }
 0xc9b   : > { %v2623_v15 = vmul.f32 %v2619_v6, %v2503_v3  ;;  %v2617_v46 = vmax.f32 %v2602_v32, 0.0 }
 0xc9c   : > { %v3163_v33 = vpop.f32.mrf.mxu1 }
 0xc9d   : > { %v2627_v36 = vadd.f32 %v2623_v15, %v2516_v25  ;;  %v2621_v38 = vmul.f32 %v2617_v46, %v2493_v0  ;;  %v2620_v35 = vmax.f32 %v3163_v33, 0.0 }
 0xc9e   : > { %v2605_v39 = vpop.f32.mrf.mxu1 }
 0xc9f   : > { %2631 = vst [vmem:[#allocation2 + $0x18] sm:$0xff] %v2627_v36  ;;  %v2625_v40 = vadd.f32 %v2621_v38, %v2514_v54  ;;  %v2624_v5 = vmul.f32 %v2620_v35, %v2508_v37  ;;  %v2618_v42 = vmax.f32 %v2605_v39, 0.0 }
 0xca1   : > { %2629 = vst [vmem:[#allocation2 + $0x10] sm:$0xff] %v2625_v40  ;;  %v2628_v59 = vadd.f32 %v2624_v5, %v2517_v29  ;;  %v2622_v8 = vmul.f32 %v2618_v42, %v4033_v14  ;;  %2636 = sbr.rel (%p2841_p4) target bundleno = 3240 (0xca8), region = 56 }
 0xca3   : > { %2632 = vst [vmem:[#allocation2 + $0x8] sm:$0xff] %v2628_v59  ;;  %v2626_v55 = vadd.f32 %v2622_v8, %v2515_v57 }
 0xca5   : > { %2630 = vst [vmem:[#allocation2] sm:$0xff] %v2626_v55 }
 0xca6   : > { %2637 = vst [vmem:[#allocation8] sm:$0xff] %v2625_v40  ;;  %2638 = vst [vmem:[#allocation8 + $0x8] sm:$0xff] %v2626_v55 }
 0xca7   : > { %2639 = vst [vmem:[#allocation8 + $0x10] sm:$0xff] %v2627_v36  ;;  %2640 = vst [vmem:[#allocation8 + $0x18] sm:$0xff] %v2628_v59 }
 0xca8 PF: > { %p4064_p6 = scmp.eq.s32.totalorder %s2759_s21, 1  ;;  %s3467_s10 = smov [#allocation8]  }
 0xca9   : > { %s2650_s11 = sshll.u32 %s3467_s10, 4  ;;  %s2651_s11 = int_to_ptr.vmem [resolvable:$true] %s2650_s11 }
 0xcaa   : > { %s3391_s12 = scalar_lea.vmem %s2651_s11, 512  ;;  %p3398_p0 = scmp.lt.s32.totalorder %s2651_s11, %s2651_s11 }
 0xcab   : > { %p3392_p7 = scmp.ne.s32.totalorder %s2651_s11, %s3391_s12  ;;  %p3399_p1 = scmp.lt.s32.totalorder %s3391_s12, %s3391_s12 }
 0xcad   : > { %p3393_p12 = pnand %p3392_p7, %p4064_p6  ;;  %p3400_p2 = por %p3399_p1, %p3398_p0 }
 0xcaf   : > { %p3394_p13 = pneg %p3393_p12 }
 0xcb1   : > { %p3401_p5 = pnand %p3400_p2, %p3394_p13 }
 0xcb3   : > { %3404 = shalt.err (!%p3401_p5)
}
 0xcb4   : > { %s3468_s18 = smov 128  }
 0xcb5   : > { %3173 = dma.vmem_to_hbm [thread:$0]  (%p4064_p6), %s2651_s11, 512, %s4094_s5, [#allocation5], %s3468_s18, %s3468_s18, %s3464_s29  }
 0xcb6   : > { %3436 = dma.done.wait (%p4064_p6), [#allocation5], 512  }
 0xcb7   : > { %3438 = vsyncadd (%p4064_p6), [#allocation5], 4294966784 }
 0xcb8 PF: > { %s18_s20 = sadd.s32 1, %s3449_s20   ;;  %s4099_s18 = smov %s3445_s19 }
 0xcb9   : > { %p15_p8 = scmp.ge.s32.totalorder %s18_s20, 4   ;;  %s4100_s19 = smov %s4102_s22 }
 0xcbb   :  { %17 = sbr.rel (!%p15_p8) target bundleno = 4 (0x4), region = 93 }
 0xcc0   :  { %2666 = vsyncpa [#allocation4], 1 }
 0xcc1   :  { %2668 = vsyncpa [#allocation4 + $0x1], 1 }
 0xcc2   :  { %2669 = vsyncpa [#allocation7], 1 }
 0xcc3   :  { %2670 = vsyncpa [#allocation5], 1 }
 0xcc4   :  { %2672 = vsyncpa [#allocation5 + $0x1], 1 }

</bundles_post_ra>
